<compile_context>
chip_gen: v5e
topology: v5e:2x2
jax: 0.10.0
libtpu: 0.0.40
codegen_flags: <defaults>
</compile_context>

<pallas_src>
import jax
import jax.numpy as jnp
from jax.experimental import pallas as pl
from jax.experimental.pallas import tpu as pltpu

HIDDEN1 = 400
HIDDEN2 = 300
LANE = 128

H1P = 512      # HIDDEN1 padded to a lane multiple
H2P = 384      # HIDDEN2 padded to a lane multiple
OUT_PAD = 128  # lane-dense output: col 0 = q1, col 1 = q2, rest zero


def _round_up(n, m):
    return (n + m - 1) // m * m


def _cdiv(n, m):
    return (n + m - 1) // m


# ---------------------------------------------------------------------------
# Kernel
# ---------------------------------------------------------------------------
def critic_vanilla_kernel(xu_ref, w1_ref, b1_ref, w2_ref, b2_ref, w3_ref, b3_ref,
                          q_ref):
    xu = xu_ref[...]                                              # (TB, IN_PAD) bf16

    # Fused layer 1 for both heads: one (TB, 2*H1P) MXU matmul, f32 accumulate.
    h1 = jnp.dot(xu, w1_ref[...], preferred_element_type=jnp.float32) + b1_ref[...]
    h1 = jnp.maximum(h1, 0.0).astype(jnp.bfloat16)
    h1a = h1[:, :H1P]                                             # lane-aligned slices
    h1b = h1[:, H1P:]

    # Layer 2, per head (independent weights), f32 accumulate + ReLU.
    h2a = jnp.dot(h1a, w2_ref[0], preferred_element_type=jnp.float32) + b2_ref[0]
    h2a = jnp.maximum(h2a, 0.0)
    h2b = jnp.dot(h1b, w2_ref[1], preferred_element_type=jnp.float32) + b2_ref[1]
    h2b = jnp.maximum(h2b, 0.0)

    # Layer 3 off the MXU (output width is 1 per head): VPU broadcast-multiply by
    # the single live weight row + XLU lane-sum.  bf16-round both operands and keep
    # products/accumulation in f32 so this matches the bf16 MXU semantics exactly.
    w3a = w3_ref[0].astype(jnp.float32)                           # (1, H2P)
    w3b = w3_ref[1].astype(jnp.float32)
    h2a_r = h2a.astype(jnp.bfloat16).astype(jnp.float32)
    h2b_r = h2b.astype(jnp.bfloat16).astype(jnp.float32)
    q1 = jnp.sum(h2a_r * w3a, axis=-1, keepdims=True)             # (TB, 1)
    q2 = jnp.sum(h2b_r * w3b, axis=-1, keepdims=True)             # (TB, 1)

    # Scatter the two scalars into the lane-dense (TB, 128) output and add biases
    # (b3 is zero outside columns 0/1, so padded lanes stay exactly zero).
    lane = jax.lax.broadcasted_iota(jnp.int32, q_ref.shape, 1)
    q = jnp.where(lane == 0, q1, jnp.where(lane == 1, q2, 0.0))
    q_ref[...] = q + b3_ref[...]


# ---------------------------------------------------------------------------
# Wrapper
# ---------------------------------------------------------------------------
def critic_vanilla_forward(x, u, kparams, *, batch_tile=512):
    """CriticVanilla.forward. Returns (q1, q2), each (B, 1) float32."""
    B = x.shape[0]
    in_pad = kparams["w1"].shape[0]

    # Concat + zero-pad the feature axis OUTSIDE the kernel (no in-kernel lane concat).
    xu = jnp.concatenate([x, u], axis=-1)
    feat = xu.shape[-1]
    assert feat <= in_pad, "params were packed for a smaller input width"
    xu = jnp.pad(xu, ((0, 0), (0, in_pad - feat)))

    # Batch tiling:
    #   * tiny batches (< 16 rows): one full block (grid of 1).
    #   * otherwise: >= 2 grid steps (even count preferred) so the "parallel" batch
    #     axis shards across both TensorCores on v7x; tile <= batch_tile, 8-aligned.
    bp = _round_up(B, 8)
    if B < 16:
        tb = bp
        steps = 1
    else:
        steps = max(2, _cdiv(bp, batch_tile))
        if steps % 2:
            steps += 1                       # even step count for megacore balance
        tb = _round_up(_cdiv(bp, steps), 8)
        bp = tb * steps
    xu = jnp.pad(xu, ((0, bp - B), (0, 0))).astype(jnp.bfloat16)

    grid = (bp // tb,)
    keep = lambda i: (0, 0)                  # weights resident across the batch grid
    keep3 = lambda i: (0, 0, 0)

    q = pl.pallas_call(
        critic_vanilla_kernel,
        out_shape=jax.ShapeDtypeStruct((bp, OUT_PAD), jnp.float32),
        grid=grid,
        in_specs=[
            pl.BlockSpec((tb, in_pad), lambda i: (i, 0)),          # xu (streamed)
            pl.BlockSpec((in_pad, 2 * H1P), keep),                 # fused W1
            pl.BlockSpec((1, 2 * H1P), keep),                      # fused b1
            pl.BlockSpec((2, H1P, H2P), keep3),                    # stacked W2
            pl.BlockSpec((2, 1, H2P), keep3),                      # stacked b2
            pl.BlockSpec((2, 1, H2P), keep3),                      # stacked W3 row-vectors
            pl.BlockSpec((1, OUT_PAD), keep),                      # fused b3
        ],
        out_specs=pl.BlockSpec((tb, OUT_PAD), lambda i: (i, 0)),
        compiler_params=pltpu.CompilerParams(
            dimension_semantics=("parallel",),
            vmem_limit_bytes=32 * 1024 * 1024,
        ),
    )(xu, kparams["w1"], kparams["b1"], kparams["w2"], kparams["b2"],
      kparams["w3"], kparams["b3"])

    return q[:B, 0:1], q[:B, 1:2]


# ---------------------------------------------------------------------------
# Parameter init (PyTorch-style) and packing into the fused/padded kernel layout
# ---------------------------------------------------------------------------
def init_mlp_base_params(key, in_dim, out_dim):
    """nn.Linear-style U(-1/sqrt(fan_in), 1/sqrt(fan_in)); weights stored (in, out)."""
    ks = jax.random.split(key, 6)

    def lin(kw, kb, fan_in, fan_out):
        bound = 1.0 / jnp.sqrt(jnp.float32(fan_in))
        w = jax.random.uniform(kw, (fan_in, fan_out), jnp.float32, -bound, bound)
        b = jax.random.uniform(kb, (1, fan_out), jnp.float32, -bound, bound)
        return w, b

    w1, b1 = lin(ks[0], ks[1], in_dim, HIDDEN1)
    w2, b2 = lin(ks[2], ks[3], HIDDEN1, HIDDEN2)
    w3, b3 = lin(ks[4], ks[5], HIDDEN2, out_dim)
    return {"w1": w1, "b1": b1, "w2": w2, "b2": b2, "w3": w3, "b3": b3}


def init_critic_vanilla_params(key, state_dim, action_dim):
    k1, k2 = jax.random.split(key)
    in_dim = state_dim + action_dim
    return {"q1": init_mlp_base_params(k1, in_dim, 1),
            "q2": init_mlp_base_params(k2, in_dim, 1)}


def pack_critic_params(params):
    """Pad/fuse raw f32 CriticVanilla params into the kernel layout (done once)."""
    p1, p2 = params["q1"], params["q2"]
    in_dim = p1["w1"].shape[0]
    in_pad = _round_up(in_dim, LANE)

    def pad2(a, rows, cols):
        return jnp.pad(a, ((0, rows - a.shape[0]), (0, cols - a.shape[1])))

    # Layer 1: fuse both heads along the output axis -> (in_pad, 2*H1P).
    w1 = jnp.concatenate([pad2(p1["w1"], in_pad, H1P), pad2(p2["w1"], in_pad, H1P)], -1)
    b1 = jnp.concatenate([pad2(p1["b1"], 1, H1P), pad2(p2["b1"], 1, H1P)], -1)

    # Layer 2: stacked per head -> (2, H1P, H2P).
    w2 = jnp.stack([pad2(p1["w2"], H1P, H2P), pad2(p2["w2"], H1P, H2P)])
    b2 = jnp.stack([pad2(p1["b2"], 1, H2P), pad2(p2["b2"], 1, H2P)])

    # Layer 3: each head's single live column stored as a (1, H2P) row vector
    # (consumed by a VPU broadcast-multiply + lane-sum in the kernel).
    w3 = jnp.stack([pad2(p1["w3"].T, 1, H2P), pad2(p2["w3"].T, 1, H2P)])
    b3 = jnp.zeros((1, OUT_PAD), jnp.float32)
    b3 = b3.at[0, 0].set(p1["b3"][0, 0]).at[0, 1].set(p2["b3"][0, 0])

    # TODO(synk): on v7x an fp8 cast of w2 (63% of MACs) with bf16 activations could
    # raise MXU throughput further; kept bf16 here for cross-generation accuracy.
    return {
        "w1": w1.astype(jnp.bfloat16), "b1": b1.astype(jnp.float32),
        "w2": w2.astype(jnp.bfloat16), "b2": b2.astype(jnp.float32),
        "w3": w3.astype(jnp.bfloat16), "b3": b3,
    }


# ---------------------------------------------------------------------------
# Pure-JAX reference
# ---------------------------------------------------------------------------
def _reference_forward(x, u, params, *, matmul_dtype=jnp.float32):
    xu = jnp.concatenate([x, u], axis=-1)

    def dot(a, b):
        return jnp.dot(a.astype(matmul_dtype), b.astype(matmul_dtype),
                       preferred_element_type=jnp.float32)

    def mlp(p):
        h = jnp.maximum(dot(xu, p["w1"]) + p["b1"], 0.0)
        h = jnp.maximum(dot(h, p["w2"]) + p["b2"], 0.0)
        return dot(h, p["w3"]) + p["b3"]

    return mlp(params["q1"]), mlp(params["q2"])


if __name__ == "__main__":
    STATE_DIM, ACTION_DIM = 16, 4

    key = jax.random.PRNGKey(0)
    kx, ku, kp = jax.random.split(key, 3)
    params = init_critic_vanilla_params(kp, STATE_DIM, ACTION_DIM)
    kparams = pack_critic_params(params)

    ok = True
    # B=2 exercises the single-block path; B=40 exercises the multi-step parallel grid.
    for B in (2, 40):
        kxb, kub = jax.random.split(jax.random.fold_in(kx, B))
        x = jax.random.normal(kxb, (B, STATE_DIM), jnp.float32)
        u = jax.random.normal(kub, (B, ACTION_DIM), jnp.float32)

        q1, q2 = critic_vanilla_forward(x, u, kparams)
        q1 = jax.block_until_ready(q1)
        q2 = jax.block_until_ready(q2)
        assert q1.shape == (B, 1) and q2.shape == (B, 1)

        # Tight check vs. a reference using identical bf16-in / f32-accumulate matmuls.
        r1, r2 = _reference_forward(x, u, params, matmul_dtype=jnp.bfloat16)
        ok &= bool(jnp.allclose(q1, r1, atol=2e-3, rtol=2e-3))
        ok &= bool(jnp.allclose(q2, r2, atol=2e-3, rtol=2e-3))

        # Loose sanity check vs. the original full-f32 semantics (bf16 rounding only).
        f1, f2 = _reference_forward(x, u, params, matmul_dtype=jnp.float32)
        ok &= bool(jnp.allclose(q1, f1, atol=1e-1, rtol=1e-1))
        ok &= bool(jnp.allclose(q2, f2, atol=1e-1, rtol=1e-1))

    assert ok, "kernel output mismatch vs. reference"
    print("KERNEL_OK")
</pallas_src>

<mosaic_0001>
module attributes {stable_mosaic.version = 11 : i64} {
  func.func @critic_vanilla_kernel(%arg0: i32, %arg1: memref<8x128xbf16, #tpu.memory_space<vmem>>, %arg2: memref<128x1024xbf16, #tpu.memory_space<vmem>>, %arg3: memref<1x1024xf32, #tpu.memory_space<vmem>>, %arg4: memref<2x512x384xbf16, #tpu.memory_space<vmem>>, %arg5: memref<2x1x384xf32, #tpu.memory_space<vmem>>, %arg6: memref<2x1x384xbf16, #tpu.memory_space<vmem>>, %arg7: memref<1x128xf32, #tpu.memory_space<vmem>>, %arg8: memref<8x128xf32, #tpu.memory_space<vmem>>) attributes {dimension_semantics = [#tpu.dimension_semantics<parallel>], iteration_bounds = array<i64: 1>, scalar_prefetch = 0 : i64, scratch_operands = 0 : i64, tpu.core_type = #tpu.core_type<tc>, window_params = [{transform_indices = @transform_0, window_bounds = array<i64: 8, 128>}, {pipeline_mode = #tpu.pipeline_mode<synchronous>, transform_indices = @transform_1, window_bounds = array<i64: 128, 1024>}, {pipeline_mode = #tpu.pipeline_mode<synchronous>, transform_indices = @transform_2, window_bounds = array<i64: 1, 1024>}, {pipeline_mode = #tpu.pipeline_mode<synchronous>, transform_indices = @transform_3, window_bounds = array<i64: 2, 512, 384>}, {pipeline_mode = #tpu.pipeline_mode<synchronous>, transform_indices = @transform_4, window_bounds = array<i64: 2, 1, 384>}, {pipeline_mode = #tpu.pipeline_mode<synchronous>, transform_indices = @transform_5, window_bounds = array<i64: 2, 1, 384>}, {pipeline_mode = #tpu.pipeline_mode<synchronous>, transform_indices = @transform_6, window_bounds = array<i64: 1, 128>}, {transform_indices = @transform_7, window_bounds = array<i64: 8, 128>}]} {
    %c0 = arith.constant 0 : index
    %c0_0 = arith.constant 0 : index
    %0 = vector.load %arg1[%c0, %c0_0] : memref<8x128xbf16, #tpu.memory_space<vmem>>, vector<8x128xbf16>
    %c0_1 = arith.constant 0 : index
    %c0_2 = arith.constant 0 : index
    %1 = vector.load %arg2[%c0_1, %c0_2] : memref<128x1024xbf16, #tpu.memory_space<vmem>>, vector<128x1024xbf16>
    %cst = arith.constant dense<0.000000e+00> : vector<8x1024xf32>
    %2 = tpu.matmul %0, %1, %cst {dimension_numbers = #tpu.dot_dimension_numbers<[1], [0], [0], [1], [0, 0, 1, 1], [], []>} : vector<8x128xbf16>, vector<128x1024xbf16>, vector<8x1024xf32> -> vector<8x1024xf32>
    %c0_3 = arith.constant 0 : index
    %c0_4 = arith.constant 0 : index
    %3 = vector.load %arg3[%c0_3, %c0_4] : memref<1x1024xf32, #tpu.memory_space<vmem>>, vector<1x1024xf32>
    %4 = vector.broadcast %3 : vector<1x1024xf32> to vector<8x1024xf32>
    %5 = arith.addf %2, %4 : vector<8x1024xf32>
    %cst_5 = arith.constant 0.000000e+00 : f32
    %6 = vector.broadcast %cst_5 : f32 to vector<8x1024xf32>
    %7 = arith.maximumf %5, %6 : vector<8x1024xf32>
    %8 = arith.truncf %7 : vector<8x1024xf32> to vector<8x1024xbf16>
    %9 = vector.extract_strided_slice %8 {offsets = [0, 0], sizes = [8, 512], strides = [1, 1]} : vector<8x1024xbf16> to vector<8x512xbf16>
    %10 = vector.extract_strided_slice %8 {offsets = [0, 512], sizes = [8, 512], strides = [1, 1]} : vector<8x1024xbf16> to vector<8x512xbf16>
    %c0_6 = arith.constant 0 : index
    %c0_7 = arith.constant 0 : index
    %c0_8 = arith.constant 0 : index
    %11 = vector.load %arg4[%c0_6, %c0_7, %c0_8] : memref<2x512x384xbf16, #tpu.memory_space<vmem>>, vector<1x512x384xbf16>
    %12 = vector.shape_cast %11 : vector<1x512x384xbf16> to vector<512x384xbf16>
    %cst_9 = arith.constant dense<0.000000e+00> : vector<8x384xf32>
    %13 = tpu.matmul %9, %12, %cst_9 {dimension_numbers = #tpu.dot_dimension_numbers<[1], [0], [0], [1], [0, 0, 1, 1], [], []>} : vector<8x512xbf16>, vector<512x384xbf16>, vector<8x384xf32> -> vector<8x384xf32>
    %c0_10 = arith.constant 0 : index
    %c0_11 = arith.constant 0 : index
    %c0_12 = arith.constant 0 : index
    %14 = vector.load %arg5[%c0_10, %c0_11, %c0_12] : memref<2x1x384xf32, #tpu.memory_space<vmem>>, vector<1x1x384xf32>
    %15 = vector.shape_cast %14 : vector<1x1x384xf32> to vector<1x384xf32>
    %16 = vector.broadcast %15 : vector<1x384xf32> to vector<8x384xf32>
    %17 = arith.addf %13, %16 : vector<8x384xf32>
    %cst_13 = arith.constant 0.000000e+00 : f32
    %18 = vector.broadcast %cst_13 : f32 to vector<8x384xf32>
    %19 = arith.maximumf %17, %18 : vector<8x384xf32>
    %c1 = arith.constant 1 : index
    %c0_14 = arith.constant 0 : index
    %c0_15 = arith.constant 0 : index
    %20 = vector.load %arg4[%c1, %c0_14, %c0_15] : memref<2x512x384xbf16, #tpu.memory_space<vmem>>, vector<1x512x384xbf16>
    %21 = vector.shape_cast %20 : vector<1x512x384xbf16> to vector<512x384xbf16>
    %cst_16 = arith.constant dense<0.000000e+00> : vector<8x384xf32>
    %22 = tpu.matmul %10, %21, %cst_16 {dimension_numbers = #tpu.dot_dimension_numbers<[1], [0], [0], [1], [0, 0, 1, 1], [], []>} : vector<8x512xbf16>, vector<512x384xbf16>, vector<8x384xf32> -> vector<8x384xf32>
    %c1_17 = arith.constant 1 : index
    %c0_18 = arith.constant 0 : index
    %c0_19 = arith.constant 0 : index
    %23 = vector.load %arg5[%c1_17, %c0_18, %c0_19] : memref<2x1x384xf32, #tpu.memory_space<vmem>>, vector<1x1x384xf32>
    %24 = vector.shape_cast %23 : vector<1x1x384xf32> to vector<1x384xf32>
    %25 = vector.broadcast %24 : vector<1x384xf32> to vector<8x384xf32>
    %26 = arith.addf %22, %25 : vector<8x384xf32>
    %cst_20 = arith.constant 0.000000e+00 : f32
    %27 = vector.broadcast %cst_20 : f32 to vector<8x384xf32>
    %28 = arith.maximumf %26, %27 : vector<8x384xf32>
    %c0_21 = arith.constant 0 : index
    %c0_22 = arith.constant 0 : index
    %c0_23 = arith.constant 0 : index
    %29 = vector.load %arg6[%c0_21, %c0_22, %c0_23] : memref<2x1x384xbf16, #tpu.memory_space<vmem>>, vector<1x1x384xbf16>
    %30 = vector.shape_cast %29 : vector<1x1x384xbf16> to vector<1x384xbf16>
    %31 = arith.extf %30 : vector<1x384xbf16> to vector<1x384xf32>
    %c1_24 = arith.constant 1 : index
    %c0_25 = arith.constant 0 : index
    %c0_26 = arith.constant 0 : index
    %32 = vector.load %arg6[%c1_24, %c0_25, %c0_26] : memref<2x1x384xbf16, #tpu.memory_space<vmem>>, vector<1x1x384xbf16>
    %33 = vector.shape_cast %32 : vector<1x1x384xbf16> to vector<1x384xbf16>
    %34 = arith.extf %33 : vector<1x384xbf16> to vector<1x384xf32>
    %35 = arith.truncf %19 : vector<8x384xf32> to vector<8x384xbf16>
    %36 = arith.extf %35 : vector<8x384xbf16> to vector<8x384xf32>
    %37 = arith.truncf %28 : vector<8x384xf32> to vector<8x384xbf16>
    %38 = arith.extf %37 : vector<8x384xbf16> to vector<8x384xf32>
    %39 = vector.broadcast %31 : vector<1x384xf32> to vector<8x384xf32>
    %40 = arith.mulf %36, %39 : vector<8x384xf32>
    %cst_27 = arith.constant dense<0.000000e+00> : vector<8xf32>
    %41 = vector.multi_reduction <add>, %40, %cst_27 [1] : vector<8x384xf32> to vector<8xf32>
    %42 = vector.shape_cast %41 : vector<8xf32> to vector<8x1xf32>
    %43 = vector.broadcast %34 : vector<1x384xf32> to vector<8x384xf32>
    %44 = arith.mulf %38, %43 : vector<8x384xf32>
    %cst_28 = arith.constant dense<0.000000e+00> : vector<8xf32>
    %45 = vector.multi_reduction <add>, %44, %cst_28 [1] : vector<8x384xf32> to vector<8xf32>
    %46 = vector.shape_cast %45 : vector<8xf32> to vector<8x1xf32>
    %47 = tpu.iota {dimensions = array<i32: 1>} : vector<8x128xi32>
    %c0_i32 = arith.constant 0 : i32
    %48 = vector.broadcast %c0_i32 : i32 to vector<8x128xi32>
    %49 = arith.cmpi eq, %47, %48 : vector<8x128xi32>
    %c1_i32 = arith.constant 1 : i32
    %50 = vector.broadcast %c1_i32 : i32 to vector<8x128xi32>
    %51 = arith.cmpi eq, %47, %50 : vector<8x128xi32>
    %cst_29 = arith.constant 0.000000e+00 : f32
    %52 = vector.shape_cast %46 : vector<8x1xf32> to vector<8x1xf32>
    %53 = vector.broadcast %52 : vector<8x1xf32> to vector<8x128xf32>
    %54 = vector.broadcast %cst_29 : f32 to vector<8x128xf32>
    %55 = arith.select %51, %53, %54 : vector<8x128xi1>, vector<8x128xf32>
    %56 = vector.shape_cast %42 : vector<8x1xf32> to vector<8x1xf32>
    %57 = vector.broadcast %56 : vector<8x1xf32> to vector<8x128xf32>
    %58 = arith.select %49, %57, %55 : vector<8x128xi1>, vector<8x128xf32>
    %c0_30 = arith.constant 0 : index
    %c0_31 = arith.constant 0 : index
    %59 = vector.load %arg7[%c0_30, %c0_31] : memref<1x128xf32, #tpu.memory_space<vmem>>, vector<1x128xf32>
    %60 = vector.broadcast %59 : vector<1x128xf32> to vector<8x128xf32>
    %61 = arith.addf %58, %60 : vector<8x128xf32>
    %c0_32 = arith.constant 0 : index
    %c0_33 = arith.constant 0 : index
    %62 = vector.load %arg8[%c0_32, %c0_33] : memref<8x128xf32, #tpu.memory_space<vmem>>, vector<8x128xf32>
    tpu.vector_store %arg8[%c0_32, %c0_33], %61 {strides = array<i32>} : memref<8x128xf32, #tpu.memory_space<vmem>>, vector<8x128xf32>,
    return
  }
  func.func @transform_0(%arg0: i32) -> (i32, i32) {
    %c0_i32 = arith.constant 0 : i32
    %c0_i32_0 = arith.constant 0 : i32
    return %arg0, %c0_i32 : i32, i32
  }
  func.func @transform_1(%arg0: i32) -> (i32, i32) {
    %c0_i32 = arith.constant 0 : i32
    %c0_i32_0 = arith.constant 0 : i32
    %c0_i32_1 = arith.constant 0 : i32
    return %c0_i32, %c0_i32_0 : i32, i32
  }
  func.func @transform_2(%arg0: i32) -> (i32, i32) {
    %c0_i32 = arith.constant 0 : i32
    %c0_i32_0 = arith.constant 0 : i32
    %c0_i32_1 = arith.constant 0 : i32
    return %c0_i32, %c0_i32_0 : i32, i32
  }
  func.func @transform_3(%arg0: i32) -> (i32, i32, i32) {
    %c0_i32 = arith.constant 0 : i32
    %c0_i32_0 = arith.constant 0 : i32
    %c0_i32_1 = arith.constant 0 : i32
    %c0_i32_2 = arith.constant 0 : i32
    return %c0_i32, %c0_i32_0, %c0_i32_1 : i32, i32, i32
  }
  func.func @transform_4(%arg0: i32) -> (i32, i32, i32) {
    %c0_i32 = arith.constant 0 : i32
    %c0_i32_0 = arith.constant 0 : i32
    %c0_i32_1 = arith.constant 0 : i32
    %c0_i32_2 = arith.constant 0 : i32
    return %c0_i32, %c0_i32_0, %c0_i32_1 : i32, i32, i32
  }
  func.func @transform_5(%arg0: i32) -> (i32, i32, i32) {
    %c0_i32 = arith.constant 0 : i32
    %c0_i32_0 = arith.constant 0 : i32
    %c0_i32_1 = arith.constant 0 : i32
    %c0_i32_2 = arith.constant 0 : i32
    return %c0_i32, %c0_i32_0, %c0_i32_1 : i32, i32, i32
  }
  func.func @transform_6(%arg0: i32) -> (i32, i32) {
    %c0_i32 = arith.constant 0 : i32
    %c0_i32_0 = arith.constant 0 : i32
    %c0_i32_1 = arith.constant 0 : i32
    return %c0_i32, %c0_i32_0 : i32, i32
  }
  func.func @transform_7(%arg0: i32) -> (i32, i32) {
    %c0_i32 = arith.constant 0 : i32
    %c0_i32_0 = arith.constant 0 : i32
    return %arg0, %c0_i32 : i32, i32
  }
}

</mosaic_0001>

<bundles_post_ra>
// kernel: tpu_custom_call.1
= control target key start
LH: loop header
LB: loop body
LE: loop exit
PB: predicated region body
PF: predicated region fallthrough
CT: control target
= control target key end

     0   :  { %12 = vsyncpa [#allocation3], 0  ;;  %s3902_s0 = inlined_call_operand.hbm [shape: bf16[8,128], index: 0, kind: input, shape index: {}]   ;;  %s3903_s1 = inlined_call_operand.hbm [shape: bf16[128,1024], index: 1, kind: input, shape index: {}]   ;;  %s3904_s2 = inlined_call_operand.vmem [shape: f32[1,1024], index: 2, kind: input, shape index: {}]   ;;  %s3905_s3 = inlined_call_operand.hbm [shape: bf16[2,512,384], index: 3, kind: input, shape index: {}]   ;;  %s3906_s4 = inlined_call_operand.hbm [shape: f32[2,1,384], index: 4, kind: input, shape index: {}]   ;;  %s3907_s5 = inlined_call_operand.vmem [shape: bf16[2,1,384], index: 5, kind: input, shape index: {}]   ;;  %s3908_s6 = inlined_call_operand.vmem [shape: f32[1,128], index: 6, kind: input, shape index: {}]   ;;  %s3909_s7 = inlined_call_operand.hbm [shape: f32[8,128], index: 7, kind: output, shape index: {}]  }
   0x1   :  { %13 = vsyncpa [#allocation6], 0 }
   0x2   :  { %14 = vsyncpa [#allocation9], 0  ;;  %s31_s26 = sshll.u32 %s3903_s1, 4  ;;  %s32_s26 = int_to_ptr.hbm [resolvable:$true] %s31_s26 }
   0x3   :  { %15 = vsyncpa [#allocation4], 0  ;;  %s3752_s27 = smov [#allocation5]   ;;  %s21_s8 = sshll.u32 %s3902_s0, 4  ;;  %s22_s8 = int_to_ptr.hbm [resolvable:$true] %s21_s8 }
   0x4   :  { %s33_s28 = sshll.u32 %s3752_s27, 4  ;;  %s3753_s9 = smov 512   ;;  %s34_s28 = int_to_ptr.vmem [resolvable:$true] %s33_s28 }
   0x5   :  { %s3754_s10 = smov 32   ;;  %s3755_s11 = smov [#allocation2]  }
   0x6   :  { %39 = dma.hbm_to_vmem [thread:$0]  %s32_s26, 8192, %s34_s28, [#allocation6], %s3753_s9, %s3753_s9, %s3754_s10  }
   0x7   :  { %s23_s12 = sshll.u32 %s3755_s11, 4  ;;  %s46_s15 = sshll.u32 %s3905_s3, 4  ;;  %s24_s12 = int_to_ptr.vmem [resolvable:$true] %s23_s12  ;;  %s47_s15 = int_to_ptr.hbm [resolvable:$true] %s46_s15 }
   0x8   :  { %26 = dma.hbm_to_vmem [thread:$0]  %s22_s8, 64, %s24_s12, [#allocation3]  }
   0x9   :  { %s3756_s1 = smov [#allocation7]   ;;  %s59_s0 = sshll.u32 %s3906_s4, 4  ;;  %s60_s0 = int_to_ptr.hbm [resolvable:$true] %s59_s0 }
   0xa   :  { %s48_s16 = sshll.u32 %s3756_s1, 4  ;;  %s3757_s19 = smov 192   ;;  %s49_s16 = int_to_ptr.vmem [resolvable:$true] %s48_s16 }
   0xb   :  { %s3758_s20 = smov 12   ;;  %s3759_s21 = smov [#allocation8]  }
   0xc   :  { %54 = dma.hbm_to_vmem [thread:$0]  %s47_s15, 24576, %s49_s16, [#allocation6], %s3757_s19, %s3757_s19, %s3758_s20  }
   0xd   :  { %s61_s22 = sshll.u32 %s3759_s21, 4  ;;  %s3760_s23 = smov 48   ;;  %s62_s22 = int_to_ptr.vmem [resolvable:$true] %s61_s22 }
   0xe   :  { %s3761_s24 = smov 3  }
   0xf   :  { %67 = dma.hbm_to_vmem [thread:$0]  %s60_s0, 96, %s62_s22, [#allocation9], %s3760_s23, %s3760_s23, %s3761_s24  }
  0x10   :  { %3744 = dma.done.wait [#allocation3], 64  }
  0x11   :  { %3745 = vsyncadd [#allocation3], 4294967232 }
  0x12   :  { %3746 = dma.done.wait [#allocation6], 32768  }
  0x13   :  { %3747 = vsyncadd [#allocation6], 4294934528 }
  0x14   :  { %3748 = dma.done.wait [#allocation9], 96  }
  0x15   :  { %3749 = vsyncadd [#allocation9], 4294967200  ;;  %v2557_v0 = vld [vmem:[#allocation5 + $0x1c0] sm:$0xf]  ;;  %v3412_v2 = vld [vmem:[#allocation5 + $0x1c4] sm:$0xf] }
  0x16   :  { %v3416_v1 = vld [vmem:[#allocation5 + $0x1dc] sm:$0xf0]  ;;  %v2559_v4 = vld [vmem:[#allocation5 + $0x1e0] sm:$0xf0]  ;;  %v2565_v5 = vld [vmem:[#allocation5 + $0x1c8] sm:$0xf] }
  0x17   :  { %v2558_v3 = vor.u32 %v3416_v1, %v2557_v0  ;;  %v3417_v6 = vld [vmem:[#allocation5 + $0x1e4] sm:$0xf0]  ;;  %v2562_v7 = vor.u32 %v3412_v2, %v2559_v4  ;;  %v3413_v9 = vld [vmem:[#allocation5 + $0x1cc] sm:$0xf]  ;;  %v2525_v11 = vld [vmem:[#allocation5 + $0x180] sm:$0xf] }
  0x18   :  { %v2566_v8 = vor.u32 %v3417_v6, %v2565_v5  ;;  %v2567_v10 = vld [vmem:[#allocation5 + $0x1e8] sm:$0xf0]  ;;  %v3408_v13 = vld [vmem:[#allocation5 + $0x19c] sm:$0xf0]  ;;  %v3404_v14 = vld [vmem:[#allocation5 + $0x184] sm:$0xf] }
  0x19   :  { %491 = vmatpush.bf16.msra.mxu0 %v2558_v3  ;;  %v2570_v12 = vor.u32 %v3413_v9, %v2567_v10  ;;  %v2527_v15 = vld [vmem:[#allocation5 + $0x1a0] sm:$0xf0]  ;;  %504 = vmatpush.bf16.msra.mxu1 %v2562_v7  ;;  %v2526_v16 = vor.u32 %v3408_v13, %v2525_v11  ;;  %v2533_v18 = vld [vmem:[#allocation5 + $0x188] sm:$0xf]  ;;  %v3405_v20 = vld [vmem:[#allocation5 + $0x18c] sm:$0xf] }
  0x1a   :  { %517 = vmatpush.bf16.msra.mxu2 %v2566_v8  ;;  %v2530_v17 = vor.u32 %v3404_v14, %v2527_v15  ;;  %v3409_v19 = vld [vmem:[#allocation5 + $0x1a4] sm:$0xf0]  ;;  %v2535_v22 = vld [vmem:[#allocation5 + $0x1a8] sm:$0xf0]  ;;  %v2493_v23 = vld [vmem:[#allocation5 + $0x140] sm:$0xf] }
  0x1b   :  { %530 = vmatpush.bf16.msra.mxu3 %v2570_v12  ;;  %v2534_v21 = vor.u32 %v3409_v19, %v2533_v18  ;;  %v3400_v24 = vld [vmem:[#allocation5 + $0x15c] sm:$0xf0]  ;;  %v2538_v25 = vor.u32 %v3405_v20, %v2535_v22  ;;  %v3396_v26 = vld [vmem:[#allocation5 + $0x144] sm:$0xf]  ;;  %v2501_v28 = vld [vmem:[#allocation5 + $0x148] sm:$0xf] }
  0x1c   :  { %v2495_v27 = vld [vmem:[#allocation5 + $0x160] sm:$0xf0]  ;;  %v2494_v29 = vor.u32 %v3400_v24, %v2493_v23  ;;  %v3401_v30 = vld [vmem:[#allocation5 + $0x164] sm:$0xf0]  ;;  %v3397_v31 = vld [vmem:[#allocation5 + $0x14c] sm:$0xf] }
  0x1d   :  { %492 = vmatpush.bf16.msra.mxu0 %v2526_v16  ;;  %v2503_v32 = vld [vmem:[#allocation5 + $0x168] sm:$0xf0]  ;;  %505 = vmatpush.bf16.msra.mxu1 %v2530_v17  ;;  %v2498_v33 = vor.u32 %v3396_v26, %v2495_v27  ;;  %v2502_v34 = vor.u32 %v3401_v30, %v2501_v28  ;;  %v2461_v35 = vld [vmem:[#allocation5 + $0x100] sm:$0xf]  ;;  %v3388_v37 = vld [vmem:[#allocation5 + $0x104] sm:$0xf] }
  0x1e   :  { %518 = vmatpush.bf16.msra.mxu2 %v2534_v21  ;;  %v3392_v36 = vld [vmem:[#allocation5 + $0x11c] sm:$0xf0]  ;;  %v2506_v38 = vor.u32 %v3397_v31, %v2503_v32  ;;  %v2463_v39 = vld [vmem:[#allocation5 + $0x120] sm:$0xf0]  ;;  %v2469_v40 = vld [vmem:[#allocation5 + $0x108] sm:$0xf] }
  0x1f   :  { %531 = vmatpush.bf16.msra.mxu3 %v2538_v25  ;;  %v3393_v41 = vld [vmem:[#allocation5 + $0x124] sm:$0xf0]  ;;  %v3389_v42 = vld [vmem:[#allocation5 + $0x10c] sm:$0xf]  ;;  %v2462_v44 = vor.u32 %v3392_v36, %v2461_v35  ;;  %v2466_v45 = vor.u32 %v3388_v37, %v2463_v39  ;;  %v2429_v47 = vld [vmem:[#allocation5 + $0xc0] sm:$0xf] }
  0x20   :  { %v2471_v43 = vld [vmem:[#allocation5 + $0x128] sm:$0xf0]  ;;  %v2470_v46 = vor.u32 %v3393_v41, %v2469_v40  ;;  %v3384_v48 = vld [vmem:[#allocation5 + $0xdc] sm:$0xf0]  ;;  %v3380_v49 = vld [vmem:[#allocation5 + $0xc4] sm:$0xf] }
  0x21   :  { %493 = vmatpush.bf16.msra.mxu0 %v2494_v29  ;;  %506 = vmatpush.bf16.msra.mxu1 %v2498_v33  ;;  %v2474_v50 = vor.u32 %v3389_v42, %v2471_v43  ;;  %v2431_v51 = vld [vmem:[#allocation5 + $0xe0] sm:$0xf0]  ;;  %v2437_v52 = vld [vmem:[#allocation5 + $0xc8] sm:$0xf]  ;;  %v3381_v54 = vld [vmem:[#allocation5 + $0xcc] sm:$0xf]  ;;  %v2430_v56 = vor.u32 %v3384_v48, %v2429_v47 }
  0x22   :  { %519 = vmatpush.bf16.msra.mxu2 %v2502_v34  ;;  %v3385_v53 = vld [vmem:[#allocation5 + $0xe4] sm:$0xf0]  ;;  %v2439_v55 = vld [vmem:[#allocation5 + $0xe8] sm:$0xf0]  ;;  %v2434_v57 = vor.u32 %v3380_v49, %v2431_v51  ;;  %v2397_v59 = vld [vmem:[#allocation5 + $0x80] sm:$0xf] }
  0x23   :  { %532 = vmatpush.bf16.msra.mxu3 %v2506_v38  ;;  %v2438_v58 = vor.u32 %v3385_v53, %v2437_v52  ;;  %v3376_v60 = vld [vmem:[#allocation5 + $0x9c] sm:$0xf0]  ;;  %v3372_v61 = vld [vmem:[#allocation5 + $0x84] sm:$0xf]  ;;  %v2442_v62 = vor.u32 %v3381_v54, %v2439_v55  ;;  %v2405_v0 = vld [vmem:[#allocation5 + $0x88] sm:$0xf] }
  0x24   :  { %v2399_v63 = vld [vmem:[#allocation5 + $0xa0] sm:$0xf0]  ;;  %v3377_v1 = vld [vmem:[#allocation5 + $0xa4] sm:$0xf0]  ;;  %v3373_v2 = vld [vmem:[#allocation5 + $0x8c] sm:$0xf]  ;;  %v2398_v4 = vor.u32 %v3376_v60, %v2397_v59 }
  0x25   :  { %494 = vmatpush.bf16.msra.mxu0 %v2462_v44  ;;  %507 = vmatpush.bf16.msra.mxu1 %v2466_v45  ;;  %v2407_v3 = vld [vmem:[#allocation5 + $0xa8] sm:$0xf0]  ;;  %v2402_v5 = vor.u32 %v3372_v61, %v2399_v63  ;;  %v2406_v6 = vor.u32 %v3377_v1, %v2405_v0  ;;  %v2365_v7 = vld [vmem:[#allocation5 + $0x40] sm:$0xf]  ;;  %v3364_v9 = vld [vmem:[#allocation5 + $0x44] sm:$0xf] }
  0x26   :  { %520 = vmatpush.bf16.msra.mxu2 %v2470_v46  ;;  %v3368_v8 = vld [vmem:[#allocation5 + $0x5c] sm:$0xf0]  ;;  %v2410_v10 = vor.u32 %v3373_v2, %v2407_v3  ;;  %v2367_v11 = vld [vmem:[#allocation5 + $0x60] sm:$0xf0]  ;;  %v2373_v12 = vld [vmem:[#allocation5 + $0x48] sm:$0xf] }
  0x27   :  { %533 = vmatpush.bf16.msra.mxu3 %v2474_v50  ;;  %v3369_v13 = vld [vmem:[#allocation5 + $0x64] sm:$0xf0]  ;;  %v3365_v14 = vld [vmem:[#allocation5 + $0x4c] sm:$0xf]  ;;  %v2366_v16 = vor.u32 %v3368_v8, %v2365_v7  ;;  %v2333_v17 = vld [vmem:[#allocation5] sm:$0xf]  ;;  %v2370_v18 = vor.u32 %v3364_v9, %v2367_v11 }
  0x28   :  { %v2375_v15 = vld [vmem:[#allocation5 + $0x68] sm:$0xf0]  ;;  %v2374_v19 = vor.u32 %v3369_v13, %v2373_v12  ;;  %v3360_v20 = vld [vmem:[#allocation5 + $0x1c] sm:$0xf0]  ;;  %v3356_v21 = vld [vmem:[#allocation5 + $0x4] sm:$0xf] }
  0x29   :  { %495 = vmatpush.bf16.msra.mxu0 %v2430_v56  ;;  %508 = vmatpush.bf16.msra.mxu1 %v2434_v57  ;;  %v2335_v22 = vld [vmem:[#allocation5 + $0x20] sm:$0xf0]  ;;  %v2378_v23 = vor.u32 %v3365_v14, %v2375_v15  ;;  %v2341_v24 = vld [vmem:[#allocation5 + $0x8] sm:$0xf]  ;;  %v3357_v26 = vld [vmem:[#allocation5 + $0xc] sm:$0xf]  ;;  %v2334_v30 = vor.u32 %v3360_v20, %v2333_v17 }
  0x2a   :  { %521 = vmatpush.bf16.msra.mxu2 %v2438_v58  ;;  %v3361_v25 = vld [vmem:[#allocation5 + $0x24] sm:$0xf0]  ;;  %v2343_v27 = vld [vmem:[#allocation5 + $0x28] sm:$0xf0]  ;;  %v2573_v28 = vld [vmem:[#allocation5 + $0x1d0] sm:$0xf]  ;;  %v2338_v33 = vor.u32 %v3356_v21, %v2335_v22 }
  0x2b   :  { %534 = vmatpush.bf16.msra.mxu3 %v2442_v62  ;;  %v3418_v29 = vld [vmem:[#allocation5 + $0x1ec] sm:$0xf0]  ;;  %v3414_v31 = vld [vmem:[#allocation5 + $0x1d4] sm:$0xf]  ;;  %v2342_v34 = vor.u32 %v3361_v25, %v2341_v24  ;;  %v2346_v35 = vor.u32 %v3357_v26, %v2343_v27  ;;  %v2581_v37 = vld [vmem:[#allocation5 + $0x1d8] sm:$0xf] }
  0x2c   :  { %v2575_v32 = vld [vmem:[#allocation5 + $0x1f0] sm:$0xf0]  ;;  %v2574_v36 = vor.u32 %v3418_v29, %v2573_v28  ;;  %v3419_v38 = vld [vmem:[#allocation5 + $0x1f4] sm:$0xf0]  ;;  %v3415_v39 = vld [vmem:[#allocation5 + $0x1dc] sm:$0xf] }
  0x2d   :  { %496 = vmatpush.bf16.msra.mxu0 %v2398_v4  ;;  %509 = vmatpush.bf16.msra.mxu1 %v2402_v5  ;;  %v2578_v40 = vor.u32 %v3414_v31, %v2575_v32  ;;  %v2583_v41 = vld [vmem:[#allocation5 + $0x1f8] sm:$0xf0]  ;;  %v2541_v42 = vld [vmem:[#allocation5 + $0x190] sm:$0xf]  ;;  %v3406_v45 = vld [vmem:[#allocation5 + $0x194] sm:$0xf]  ;;  %v2582_v47 = vor.u32 %v3419_v38, %v2581_v37 }
  0x2e   :  { %522 = vmatpush.bf16.msra.mxu2 %v2406_v6  ;;  %v3410_v43 = vld [vmem:[#allocation5 + $0x1ac] sm:$0xf0]  ;;  %v3815_v44 = vld [vmem:[#allocation2] sm:$0xf]  ;;  %v2543_v46 = vld [vmem:[#allocation5 + $0x1b0] sm:$0xf0]  ;;  %v2586_v48 = vor.u32 %v3415_v39, %v2583_v41 }
  0x2f   :  { %535 = vmatpush.bf16.msra.mxu3 %v2410_v10  ;;  %v2542_v49 = vor.u32 %v3410_v43, %v2541_v42  ;;  %v2549_v50 = vld [vmem:[#allocation5 + $0x198] sm:$0xf]  ;;  %v3407_v52 = vld [vmem:[#allocation5 + $0x19c] sm:$0xf]  ;;  %v2546_v53 = vor.u32 %v3406_v45, %v2543_v46  ;;  %v2509_v55 = vld [vmem:[#allocation5 + $0x150] sm:$0xf] }
  0x30   :  { %v3411_v51 = vld [vmem:[#allocation5 + $0x1b4] sm:$0xf0]  ;;  %v2551_v54 = vld [vmem:[#allocation5 + $0x1b8] sm:$0xf0]  ;;  %v3402_v56 = vld [vmem:[#allocation5 + $0x16c] sm:$0xf0] }
  0x31   :  { %497 = vmatpush.bf16.msra.mxu0 %v2366_v16  ;;  %510 = vmatpush.bf16.msra.mxu1 %v2370_v18  ;;  %v3398_v57 = vld [vmem:[#allocation5 + $0x154] sm:$0xf]  ;;  %v2550_v59 = vor.u32 %v3411_v51, %v2549_v50  ;;  %v2554_v60 = vor.u32 %v3407_v52, %v2551_v54  ;;  %v2510_v61 = vor.u32 %v3402_v56, %v2509_v55  ;;  %v2517_v62 = vld [vmem:[#allocation5 + $0x158] sm:$0xf]  ;;  %v3399_v0 = vld [vmem:[#allocation5 + $0x15c] sm:$0xf] }
  0x32   :  { %523 = vmatpush.bf16.msra.mxu2 %v2374_v19  ;;  %v2511_v58 = vld [vmem:[#allocation5 + $0x170] sm:$0xf0]  ;;  %v3403_v63 = vld [vmem:[#allocation5 + $0x174] sm:$0xf0]  ;;  %v2519_v2 = vld [vmem:[#allocation5 + $0x178] sm:$0xf0] }
  0x33   :  { %536 = vmatpush.bf16.msra.mxu3 %v2378_v23  ;;  %v2514_v1 = vor.u32 %v3398_v57, %v2511_v58  ;;  %v2477_v3 = vld [vmem:[#allocation5 + $0x110] sm:$0xf]  ;;  %v3390_v5 = vld [vmem:[#allocation5 + $0x114] sm:$0xf]  ;;  %v2518_v7 = vor.u32 %v3403_v63, %v2517_v62  ;;  %v2522_v8 = vor.u32 %v3399_v0, %v2519_v2  ;;  %v2485_v10 = vld [vmem:[#allocation5 + $0x118] sm:$0xf] }
  0x34   :  { %v3394_v4 = vld [vmem:[#allocation5 + $0x12c] sm:$0xf0]  ;;  %v2479_v6 = vld [vmem:[#allocation5 + $0x130] sm:$0xf0]  ;;  %v3395_v11 = vld [vmem:[#allocation5 + $0x134] sm:$0xf0] }
  0x35   :  { %498 = vmatpush.bf16.msra.mxu0 %v2334_v30  ;;  %511 = vmatpush.bf16.msra.mxu1 %v2338_v33  ;;  %v2478_v9 = vor.u32 %v3394_v4, %v2477_v3  ;;  %v3391_v12 = vld [vmem:[#allocation5 + $0x11c] sm:$0xf]  ;;  %v2482_v13 = vor.u32 %v3390_v5, %v2479_v6  ;;  %v2445_v15 = vld [vmem:[#allocation5 + $0xd0] sm:$0xf]  ;;  %v3382_v17 = vld [vmem:[#allocation5 + $0xd4] sm:$0xf]  ;;  %v2486_v19 = vor.u32 %v3395_v11, %v2485_v10 }
  0x36   :  { %524 = vmatpush.bf16.msra.mxu2 %v2342_v34  ;;  %v2487_v14 = vld [vmem:[#allocation5 + $0x138] sm:$0xf0]  ;;  %v3386_v16 = vld [vmem:[#allocation5 + $0xec] sm:$0xf0]  ;;  %v2447_v18 = vld [vmem:[#allocation5 + $0xf0] sm:$0xf0] }
  0x37   :  { %537 = vmatpush.bf16.msra.mxu3 %v2346_v35  ;;  %v2490_v20 = vor.u32 %v3391_v12, %v2487_v14  ;;  %v2446_v21 = vor.u32 %v3386_v16, %v2445_v15  ;;  %v2453_v22 = vld [vmem:[#allocation5 + $0xd8] sm:$0xf]  ;;  %v3383_v24 = vld [vmem:[#allocation5 + $0xdc] sm:$0xf]  ;;  %v2450_v25 = vor.u32 %v3382_v17, %v2447_v18  ;;  %v2413_v27 = vld [vmem:[#allocation5 + $0x90] sm:$0xf] }
  0x38   :  { %499 = vmatmul.bf16.vlgmr.msra.gmra.mxu0 %v3815_v44  ;;  %512 = vmatmul.bf16.vlgmr.msra.gmra.mxu1 %v3815_v44  ;;  %v3387_v23 = vld [vmem:[#allocation5 + $0xf4] sm:$0xf0]  ;;  %v2455_v26 = vld [vmem:[#allocation5 + $0xf8] sm:$0xf0]  ;;  %v3378_v28 = vld [vmem:[#allocation5 + $0xac] sm:$0xf0] }
  0x39   :  { %543 = vmatpush.bf16.msrb.mxu0 %v2574_v36  ;;  %556 = vmatpush.bf16.msrb.mxu1 %v2578_v40  ;;  %v3374_v29 = vld [vmem:[#allocation5 + $0x94] sm:$0xf]  ;;  %v2454_v31 = vor.u32 %v3387_v23, %v2453_v22  ;;  %v2458_v32 = vor.u32 %v3383_v24, %v2455_v26  ;;  %v2414_v33 = vor.u32 %v3378_v28, %v2413_v27  ;;  %v2421_v34 = vld [vmem:[#allocation5 + $0x98] sm:$0xf]  ;;  %v3375_v36 = vld [vmem:[#allocation5 + $0x9c] sm:$0xf] }
  0x3a   :  { %525 = vmatmul.bf16.vlgmr.msra.gmra.mxu2 %v3815_v44  ;;  %538 = vmatmul.bf16.vlgmr.msra.gmra.mxu3 %v3815_v44  ;;  %v2415_v30 = vld [vmem:[#allocation5 + $0xb0] sm:$0xf0]  ;;  %v3379_v35 = vld [vmem:[#allocation5 + $0xb4] sm:$0xf0]  ;;  %v2423_v38 = vld [vmem:[#allocation5 + $0xb8] sm:$0xf0] }
  0x3b   :  { %569 = vmatpush.bf16.msrb.mxu2 %v2582_v47  ;;  %582 = vmatpush.bf16.msrb.mxu3 %v2586_v48  ;;  %v2418_v37 = vor.u32 %v3374_v29, %v2415_v30  ;;  %v2381_v39 = vld [vmem:[#allocation5 + $0x50] sm:$0xf]  ;;  %v3366_v41 = vld [vmem:[#allocation5 + $0x54] sm:$0xf]  ;;  %v2422_v43 = vor.u32 %v3379_v35, %v2421_v34  ;;  %v2389_v45 = vld [vmem:[#allocation5 + $0x58] sm:$0xf]  ;;  %v2426_v46 = vor.u32 %v3375_v36, %v2423_v38 }
  0x3c   :  { %v3370_v40 = vld [vmem:[#allocation5 + $0x6c] sm:$0xf0]  ;;  %v2383_v42 = vld [vmem:[#allocation5 + $0x70] sm:$0xf0]  ;;  %v3371_v48 = vld [vmem:[#allocation5 + $0x74] sm:$0xf0] }
  0x3d   :  { %544 = vmatpush.bf16.msrb.mxu0 %v2542_v49  ;;  %557 = vmatpush.bf16.msrb.mxu1 %v2546_v53  ;;  %v2382_v47 = vor.u32 %v3370_v40, %v2381_v39  ;;  %v3367_v49 = vld [vmem:[#allocation5 + $0x5c] sm:$0xf]  ;;  %v2386_v51 = vor.u32 %v3366_v41, %v2383_v42  ;;  %v2349_v52 = vld [vmem:[#allocation5 + $0x10] sm:$0xf]  ;;  %v3358_v54 = vld [vmem:[#allocation5 + $0x14] sm:$0xf]  ;;  %v2390_v58 = vor.u32 %v3371_v48, %v2389_v45 }
  0x3e   :  { %v2391_v50 = vld [vmem:[#allocation5 + $0x78] sm:$0xf0]  ;;  %v3362_v53 = vld [vmem:[#allocation5 + $0x2c] sm:$0xf0]  ;;  %v2351_v55 = vld [vmem:[#allocation5 + $0x30] sm:$0xf0] }
  0x3f   :  { %570 = vmatpush.bf16.msrb.mxu2 %v2550_v59  ;;  %583 = vmatpush.bf16.msrb.mxu3 %v2554_v60  ;;  %v2673_v56 = vld [vmem:[#allocation7 + $0xa8] sm:$0xf]  ;;  %v3442_v57 = vld [vmem:[#allocation7 + $0xb0] sm:$0xf0]  ;;  %v2350_v62 = vor.u32 %v3362_v53, %v2349_v52  ;;  %v2357_v63 = vld [vmem:[#allocation5 + $0x18] sm:$0xf] }
  0x40   :  { %v2769_v59 = vld [vmem:[#allocation7 + $0x168] sm:$0xf]  ;;  %v3466_v60 = vld [vmem:[#allocation7 + $0x170] sm:$0xf0]  ;;  %v3363_v0 = vld [vmem:[#allocation5 + $0x34] sm:$0xf0]  ;;  %v2674_v4 = vor.u32 %v3442_v57, %v2673_v56 }
  0x41   :  { %545 = vmatpush.bf16.msrb.mxu0 %v2510_v61  ;;  %558 = vmatpush.bf16.msrb.mxu1 %v2514_v1  ;;  %v2394_v61 = vor.u32 %v3367_v49, %v2391_v50  ;;  %v2354_v1 = vor.u32 %v3358_v54, %v2351_v55  ;;  %v3359_v2 = vld [vmem:[#allocation5 + $0x1c] sm:$0xf]  ;;  %v2661_v5 = vld [vmem:[#allocation7 + $0x90] sm:$0xf]  ;;  %v2770_v6 = vor.u32 %v3466_v60, %v2769_v59  ;;  %v2961_v16 = vld [vmem:[#allocation7 + $0x2e8] sm:$0xf] }
  0x42   :  { %v2359_v3 = vld [vmem:[#allocation5 + $0x38] sm:$0xf0]  ;;  %v2358_v10 = vor.u32 %v3363_v0, %v2357_v63  ;;  %v2757_v11 = vld [vmem:[#allocation7 + $0x150] sm:$0xf]  ;;  %v3514_v17 = vld [vmem:[#allocation7 + $0x2f0] sm:$0xf0] }
  0x43   :  { %571 = vmatpush.bf16.msrb.mxu2 %v2518_v7  ;;  %584 = vmatpush.bf16.msrb.mxu3 %v2522_v8  ;;  %v3439_v7 = vld [vmem:[#allocation7 + $0x98] sm:$0xf0]  ;;  %v2865_v8 = vld [vmem:[#allocation7 + $0x228] sm:$0xf]  ;;  %v2649_v18 = vld [vmem:[#allocation7 + $0x78] sm:$0xf] }
  0x44   :  { %v3463_v12 = vld [vmem:[#allocation7 + $0x158] sm:$0xf0]  ;;  %v2662_v14 = vor.u32 %v3439_v7, %v2661_v5  ;;  %v2745_v23 = vld [vmem:[#allocation7 + $0x138] sm:$0xf]  ;;  %v3460_v24 = vld [vmem:[#allocation7 + $0x140] sm:$0xf0] }
  0x45   :  { %546 = vmatpush.bf16.msrb.mxu0 %v2478_v9  ;;  %559 = vmatpush.bf16.msrb.mxu1 %v2482_v13  ;;  %v3490_v9 = vld [vmem:[#allocation7 + $0x230] sm:$0xf0]  ;;  %v2362_v13 = vor.u32 %v3359_v2, %v2359_v3  ;;  %v3487_v22 = vld [vmem:[#allocation7 + $0x218] sm:$0xf0]  ;;  %v2949_v28 = vld [vmem:[#allocation7 + $0x2d0] sm:$0xf] }
  0x46   :  { %v2866_v15 = vor.u32 %v3490_v9, %v2865_v8  ;;  %v3511_v29 = vld [vmem:[#allocation7 + $0x2d8] sm:$0xf0]  ;;  %v2637_v30 = vld [vmem:[#allocation7 + $0x60] sm:$0xf]  ;;  %v3484_v34 = vld [vmem:[#allocation7 + $0x200] sm:$0xf0] }
  0x47   :  { %572 = vmatpush.bf16.msrb.mxu2 %v2486_v19  ;;  %585 = vmatpush.bf16.msrb.mxu3 %v2490_v20  ;;  %v2758_v19 = vor.u32 %v3463_v12, %v2757_v11  ;;  %v3436_v20 = vld [vmem:[#allocation7 + $0x80] sm:$0xf0]  ;;  %v2733_v35 = vld [vmem:[#allocation7 + $0x120] sm:$0xf]  ;;  %v3457_v36 = vld [vmem:[#allocation7 + $0x128] sm:$0xf0] }
  0x48   :  { %v2650_v26 = vor.u32 %v3436_v20, %v2649_v18  ;;  %v2937_v40 = vld [vmem:[#allocation7 + $0x2b8] sm:$0xf]  ;;  %v3508_v41 = vld [vmem:[#allocation7 + $0x2c0] sm:$0xf0]  ;;  %v2625_v42 = vld [vmem:[#allocation7 + $0x48] sm:$0xf] }
  0x49   :  { %547 = vmatpush.bf16.msrb.mxu0 %v2446_v21  ;;  %560 = vmatpush.bf16.msrb.mxu1 %v2450_v25  ;;  %v2853_v21 = vld [vmem:[#allocation7 + $0x210] sm:$0xf]  ;;  %v2962_v25 = vor.u32 %v3514_v17, %v2961_v16  ;;  %v3430_v45 = vld [vmem:[#allocation7 + $0x50] sm:$0xf0]  ;;  %v2721_v48 = vld [vmem:[#allocation7 + $0x108] sm:$0xf] }
  0x4a   :  { %v2854_v27 = vor.u32 %v3487_v22, %v2853_v21  ;;  %v3454_v49 = vld [vmem:[#allocation7 + $0x110] sm:$0xf0]  ;;  %v2626_v50 = vor.u32 %v3430_v45, %v2625_v42  ;;  %v2925_v52 = vld [vmem:[#allocation7 + $0x2a0] sm:$0xf]  ;;  %v3505_v53 = vld [vmem:[#allocation7 + $0x2a8] sm:$0xf0] }
  0x4b   :  { %573 = vmatpush.bf16.msrb.mxu2 %v2454_v31  ;;  %586 = vmatpush.bf16.msrb.mxu3 %v2458_v32  ;;  %v2746_v31 = vor.u32 %v3460_v24, %v2745_v23  ;;  %v3433_v32 = vld [vmem:[#allocation7 + $0x68] sm:$0xf0]  ;;  %v2613_v54 = vld [vmem:[#allocation7 + $0x30] sm:$0xf]  ;;  %v2722_v55 = vor.u32 %v3454_v49, %v2721_v48  ;;  %v3427_v56 = vld [vmem:[#allocation7 + $0x38] sm:$0xf0] }
  0x4c   :  { %v2638_v38 = vor.u32 %v3433_v32, %v2637_v30  ;;  %v2817_v57 = vld [vmem:[#allocation7 + $0x1c8] sm:$0xf]  ;;  %v2709_v59 = vld [vmem:[#allocation7 + $0xf0] sm:$0xf]  ;;  %v3451_v60 = vld [vmem:[#allocation7 + $0xf8] sm:$0xf0] }
  0x4d   :  { %548 = vmatpush.bf16.msrb.mxu0 %v2414_v33  ;;  %561 = vmatpush.bf16.msrb.mxu1 %v2418_v37  ;;  %v2841_v33 = vld [vmem:[#allocation7 + $0x1f8] sm:$0xf]  ;;  %v2950_v37 = vor.u32 %v3511_v29, %v2949_v28  ;;  %v2913_v0 = vld [vmem:[#allocation7 + $0x288] sm:$0xf]  ;;  %v2710_v3 = vor.u32 %v3451_v60, %v2709_v59  ;;  %v2805_v5 = vld [vmem:[#allocation7 + $0x1b0] sm:$0xf] }
  0x4e   :  { %v2842_v39 = vor.u32 %v3484_v34, %v2841_v33  ;;  %v2601_v2 = vld [vmem:[#allocation7 + $0x18] sm:$0xf]  ;;  %v3448_v8 = vld [vmem:[#allocation7 + $0xe0] sm:$0xf0]  ;;  %v2685_v17 = vld [vmem:[#allocation7 + $0xc0] sm:$0xf] }
  0x4f   :  { %574 = vmatpush.bf16.msrb.mxu2 %v2422_v43  ;;  %587 = vmatpush.bf16.msrb.mxu3 %v2426_v46  ;;  %v2734_v43 = vor.u32 %v3457_v36, %v2733_v35  ;;  %v2829_v46 = vld [vmem:[#allocation7 + $0x1e0] sm:$0xf]  ;;  %v2697_v7 = vld [vmem:[#allocation7 + $0xd8] sm:$0xf]  ;;  %v3445_v20 = vld [vmem:[#allocation7 + $0xc8] sm:$0xf0] }
  0x50   :  { %v2698_v16 = vor.u32 %v3448_v8, %v2697_v7  ;;  %v2793_v18 = vld [vmem:[#allocation7 + $0x198] sm:$0xf]  ;;  %v3441_v21 = vld [vmem:[#allocation7 + $0xac] sm:$0xf]  ;;  %v3496_v29 = vld [vmem:[#allocation7 + $0x260] sm:$0xf0]  ;;  %v2686_v30 = vor.u32 %v3445_v20, %v2685_v17 }
  0x51   :  { %549 = vmatpush.bf16.msrb.mxu0 %v2382_v47  ;;  %562 = vmatpush.bf16.msrb.mxu1 %v2386_v51  ;;  %v3481_v47 = vld [vmem:[#allocation7 + $0x1e8] sm:$0xf0]  ;;  %v2675_v22 = vld [vmem:[#allocation7 + $0xb4] sm:$0xf0]  ;;  %v3438_v32 = vld [vmem:[#allocation7 + $0x94] sm:$0xf] }
  0x52   :  { %v2830_v51 = vor.u32 %v3481_v47, %v2829_v46  ;;  %v3465_v24 = vld [vmem:[#allocation7 + $0x16c] sm:$0xf]  ;;  %v2889_v28 = vld [vmem:[#allocation7 + $0x258] sm:$0xf]  ;;  %v2781_v33 = vld [vmem:[#allocation7 + $0x180] sm:$0xf] }
  0x53   :  { %575 = vmatpush.bf16.msrb.mxu2 %v2390_v58  ;;  %588 = vmatpush.bf16.msrb.mxu3 %v2394_v61  ;;  %v3478_v58 = vld [vmem:[#allocation7 + $0x1d0] sm:$0xf0]  ;;  %v2926_v61 = vor.u32 %v3505_v53, %v2925_v52  ;;  %v3469_v34 = vld [vmem:[#allocation7 + $0x188] sm:$0xf0]  ;;  %v2663_v36 = vld [vmem:[#allocation7 + $0x9c] sm:$0xf0] }
  0x54   :  { %v2818_v63 = vor.u32 %v3478_v58, %v2817_v57  ;;  %v2782_v42 = vor.u32 %v3469_v34, %v2781_v33  ;;  %v3493_v45 = vld [vmem:[#allocation7 + $0x248] sm:$0xf0]  ;;  %v2666_v46 = vor.u32 %v3438_v32, %v2663_v36  ;;  %v2963_v49 = vld [vmem:[#allocation7 + $0x2f4] sm:$0xf0]  ;;  %v3486_v52 = vld [vmem:[#allocation7 + $0x214] sm:$0xf] }
  0x55   :  { %550 = vmatpush.bf16.msrb.mxu0 %v2350_v62  ;;  %563 = vmatpush.bf16.msrb.mxu1 %v2354_v1  ;;  %v2614_v62 = vor.u32 %v3427_v56, %v2613_v54  ;;  %v3502_v1 = vld [vmem:[#allocation7 + $0x290] sm:$0xf0]  ;;  %v3513_v48 = vld [vmem:[#allocation7 + $0x2ec] sm:$0xf]  ;;  %v2855_v53 = vld [vmem:[#allocation7 + $0x21c] sm:$0xf0] }
  0x56   :  { %v2914_v9 = vor.u32 %v3502_v1, %v2913_v0  ;;  %v2747_v56 = vld [vmem:[#allocation7 + $0x144] sm:$0xf0]  ;;  %v2966_v57 = vor.u32 %v3513_v48, %v2963_v49  ;;  %v2858_v59 = vor.u32 %v3486_v52, %v2855_v53  ;;  %v3510_v60 = vld [vmem:[#allocation7 + $0x2d4] sm:$0xf]  ;;  %v2639_v0 = vld [vmem:[#allocation7 + $0x6c] sm:$0xf0] }
  0x57   :  { %576 = vmatpush.bf16.msrb.mxu2 %v2358_v10  ;;  %589 = vmatpush.bf16.msrb.mxu3 %v2362_v13  ;;  %v2901_v10 = vld [vmem:[#allocation7 + $0x270] sm:$0xf]  ;;  %v3499_v13 = vld [vmem:[#allocation7 + $0x278] sm:$0xf0]  ;;  %v3504_v20 = vld [vmem:[#allocation7 + $0x2a4] sm:$0xf] }
  0x58   :  { %551 = vmatmul.bf16.vlgmr.msrb.gmra.mxu0 %v3815_v44  ;;  %564 = vmatmul.bf16.vlgmr.msrb.gmra.mxu1 %v3815_v44  ;;  %v2902_v23 = vor.u32 %v3499_v13, %v2901_v10  ;;  %v3483_v1 = vld [vmem:[#allocation7 + $0x1fc] sm:$0xf]  ;;  %v3453_v13 = vld [vmem:[#allocation7 + $0x10c] sm:$0xf]  ;;  %v2915_v34 = vld [vmem:[#allocation7 + $0x294] sm:$0xf0] }
  0x59   :  { %1269 = vmatpush.bf16.msra.mxu0 %v2674_v4  ;;  %1282 = vmatpush.bf16.msra.mxu1 %v2770_v6  ;;  %v3424_v4 = vld [vmem:[#allocation7 + $0x20] sm:$0xf0]  ;;  %v3475_v6 = vld [vmem:[#allocation7 + $0x1b8] sm:$0xf0]  ;;  %v3501_v32 = vld [vmem:[#allocation7 + $0x28c] sm:$0xf] }
  0x5a   :  { %577 = vmatmul.bf16.vlgmr.msrb.gmra.mxu2 %v3815_v44  ;;  %590 = vmatmul.bf16.vlgmr.msrb.gmra.mxu3 %v3815_v44  ;;  %v2938_v44 = vor.u32 %v3508_v41, %v2937_v40  ;;  %v2602_v11 = vor.u32 %v3424_v4, %v2601_v2  ;;  %v2806_v12 = vor.u32 %v3475_v6, %v2805_v5  ;;  %v3462_v40 = vld [vmem:[#allocation7 + $0x154] sm:$0xf]  ;;  %v2759_v41 = vld [vmem:[#allocation7 + $0x15c] sm:$0xf0]  ;;  %v2843_v2 = vld [vmem:[#allocation7 + $0x204] sm:$0xf0] }
  0x5b   :  { %1295 = vmatpush.bf16.msra.mxu2 %v2866_v15  ;;  %1308 = vmatpush.bf16.msra.mxu3 %v2962_v25  ;;  %v3421_v15 = vld [vmem:[#allocation7 + $0x8] sm:$0xf0]  ;;  %v2771_v25 = vld [vmem:[#allocation7 + $0x174] sm:$0xf0]  ;;  %v2735_v4 = vld [vmem:[#allocation7 + $0x12c] sm:$0xf0]  ;;  %v2846_v7 = vor.u32 %v3483_v1, %v2843_v2 }
  0x5c   :  { %v2774_v35 = vor.u32 %v3465_v24, %v2771_v25  ;;  %v3507_v8 = vld [vmem:[#allocation7 + $0x2bc] sm:$0xf]  ;;  %v3426_v24 = vld [vmem:[#allocation7 + $0x34] sm:$0xf]  ;;  %v2615_v25 = vld [vmem:[#allocation7 + $0x3c] sm:$0xf0] }
  0x5d   :  { %1270 = vmatpush.bf16.msra.mxu0 %v2662_v14  ;;  %1283 = vmatpush.bf16.msra.mxu1 %v2758_v19  ;;  %v2589_v14 = vld [vmem:[#allocation7] sm:$0xf]  ;;  %v3472_v19 = vld [vmem:[#allocation7 + $0x1a0] sm:$0xf0]  ;;  %v3423_v36 = vld [vmem:[#allocation7 + $0x1c] sm:$0xf] }
  0x5e   :  { %v3420_v49 = vld [vmem:[#allocation7 + $0x4] sm:$0xf]  ;;  %v2687_v52 = vld [vmem:[#allocation7 + $0xcc] sm:$0xf0]  ;;  %v3828_v2 = vld [vmem:[%s3904_s2] sm:$0xff]  ;;  %s3762_s29 = smov [#allocation10]  }
  0x5f   :  { %1296 = vmatpush.bf16.msra.mxu2 %v2854_v27  ;;  %1309 = vmatpush.bf16.msra.mxu3 %v2950_v37  ;;  %v2794_v27 = vor.u32 %v3472_v19, %v2793_v18  ;;  %v3489_v37 = vld [vmem:[#allocation7 + $0x22c] sm:$0xf]  ;;  %v3480_v18 = vld [vmem:[#allocation7 + $0x1e4] sm:$0xf]  ;;  %v2831_v19 = vld [vmem:[#allocation7 + $0x1ec] sm:$0xf0] }
  0x60   :  { %s2317_s30 = sshll.u32 %s3762_s29, 4  ;;  %s2319_s10 = sshll.u32 %s3909_s7, 4  ;;  %s2318_s30 = int_to_ptr.vmem [resolvable:$true] %s2317_s30  ;;  %s2320_s10 = int_to_ptr.hbm [resolvable:$true] %s2319_s10 }
  0x61   :  { %1271 = vmatpush.bf16.msra.mxu0 %v2650_v26  ;;  %1284 = vmatpush.bf16.msra.mxu1 %v2746_v31  ;;  %v2590_v26 = vor.u32 %v3421_v15, %v2589_v14  ;;  %v2678_v31 = vor.u32 %v3441_v21, %v2675_v22  ;;  %v2723_v14 = vld [vmem:[#allocation7 + $0x114] sm:$0xf0]  ;;  %v2834_v21 = vor.u32 %v3480_v18, %v2831_v19  ;;  %v2927_v22 = vld [vmem:[#allocation7 + $0x2ac] sm:$0xf0] }
  0x62   :  { %v2726_v17 = vor.u32 %v3453_v13, %v2723_v14  ;;  %v2681_v13 = vld [vmem:[#allocation7 + $0xb0] sm:$0xf] }
  0x63   :  { %1297 = vmatpush.bf16.msra.mxu2 %v2842_v39  ;;  %1310 = vmatpush.bf16.msra.mxu3 %v2938_v44  ;;  %v2890_v39 = vor.u32 %v3496_v29, %v2889_v28  ;;  %v3435_v44 = vld [vmem:[#allocation7 + $0x7c] sm:$0xf]  ;;  %v2711_v28 = vld [vmem:[#allocation7 + $0xfc] sm:$0xf0] }
  0x65   :  { %1272 = vmatpush.bf16.msra.mxu0 %v2638_v38  ;;  %1285 = vmatpush.bf16.msra.mxu1 %v2734_v43  ;;  %v2867_v38 = vld [vmem:[#allocation7 + $0x234] sm:$0xf0]  ;;  %v2877_v43 = vld [vmem:[#allocation7 + $0x240] sm:$0xf] }
  0x66   :  { %v2870_v47 = vor.u32 %v3489_v37, %v2867_v38  ;;  %v2878_v54 = vor.u32 %v3493_v45, %v2877_v43  ;;  %v2603_v37 = vld [vmem:[#allocation7 + $0x24] sm:$0xf0]  ;;  %v3447_v38 = vld [vmem:[#allocation7 + $0xdc] sm:$0xf]  ;;  %v2807_v43 = vld [vmem:[#allocation7 + $0x1bc] sm:$0xf0] }
  0x67   :  { %1298 = vmatpush.bf16.msra.mxu2 %v2830_v51  ;;  %1311 = vmatpush.bf16.msra.mxu3 %v2926_v61  ;;  %v2651_v51 = vld [vmem:[#allocation7 + $0x84] sm:$0xf0]  ;;  %v2951_v61 = vld [vmem:[#allocation7 + $0x2dc] sm:$0xf0] }
  0x68   :  { %v2654_v58 = vor.u32 %v3435_v44, %v2651_v51  ;;  %v2954_v5 = vor.u32 %v3510_v60, %v2951_v61  ;;  %v2591_v44 = vld [vmem:[#allocation7 + $0xc] sm:$0xf0]  ;;  %v3468_v60 = vld [vmem:[#allocation7 + $0x184] sm:$0xf] }
  0x69   :  { %1273 = vmatpush.bf16.msra.mxu0 %v2626_v50  ;;  %1286 = vmatpush.bf16.msra.mxu1 %v2722_v55  ;;  %v2762_v50 = vor.u32 %v3462_v40, %v2759_v41  ;;  %v3459_v55 = vld [vmem:[#allocation7 + $0x13c] sm:$0xf]  ;;  %v2699_v40 = vld [vmem:[#allocation7 + $0xe4] sm:$0xf0]  ;;  %v2594_v51 = vor.u32 %v3420_v49, %v2591_v44  ;;  %v2783_v61 = vld [vmem:[#allocation7 + $0x18c] sm:$0xf0] }
  0x6a   :  { %v2702_v41 = vor.u32 %v3447_v38, %v2699_v40  ;;  %v2969_v38 = vld [vmem:[#allocation7 + $0x2f0] sm:$0xf] }
  0x6b   :  { %1299 = vmatpush.bf16.msra.mxu2 %v2818_v63  ;;  %1312 = vmatpush.bf16.msra.mxu3 %v2914_v9  ;;  %v2750_v63 = vor.u32 %v3459_v55, %v2747_v56  ;;  %v2939_v9 = vld [vmem:[#allocation7 + $0x2c4] sm:$0xf0]  ;;  %v3495_v56 = vld [vmem:[#allocation7 + $0x25c] sm:$0xf] }
  0x6c   :  { %v2942_v15 = vor.u32 %v3507_v8, %v2939_v9  ;;  %v2795_v55 = vld [vmem:[#allocation7 + $0x1a4] sm:$0xf0] }
  0x6d   :  { %1274 = vmatpush.bf16.msra.mxu0 %v2614_v62  ;;  %1287 = vmatpush.bf16.msra.mxu1 %v2710_v3  ;;  %v3432_v62 = vld [vmem:[#allocation7 + $0x64] sm:$0xf] }
  0x6e   :  { %v3456_v3 = vld [vmem:[#allocation7 + $0x124] sm:$0xf]  ;;  %v2642_v6 = vor.u32 %v3432_v62, %v2639_v0  ;;  %v2786_v62 = vor.u32 %v3468_v60, %v2783_v61  ;;  %v2879_v0 = vld [vmem:[#allocation7 + $0x24c] sm:$0xf0]  ;;  %v2645_v61 = vld [vmem:[#allocation7 + $0x68] sm:$0xf] }
  0x6f   :  { %1300 = vmatpush.bf16.msra.mxu2 %v2806_v12  ;;  %1313 = vmatpush.bf16.msra.mxu3 %v2902_v23  ;;  %v2738_v10 = vor.u32 %v3456_v3, %v2735_v4  ;;  %v2627_v12 = vld [vmem:[#allocation7 + $0x54] sm:$0xf0]  ;;  %v2930_v23 = vor.u32 %v3504_v20, %v2927_v22  ;;  %v155_v3 = vperm.slane %v3828_v2, 0  ;;  %v156_v4 = vperm.slane %v3828_v2, 1  ;;  %v3512_v60 = vld [vmem:[#allocation7 + $0x2e0] sm:$0xf0] }
  0x71   :  { %1275 = vmatpush.bf16.msra.mxu0 %v2602_v11  ;;  %1288 = vmatpush.bf16.msra.mxu1 %v2698_v16  ;;  %v3429_v11 = vld [vmem:[#allocation7 + $0x4c] sm:$0xf] }
  0x72   :  { %v2630_v16 = vor.u32 %v3429_v11, %v2627_v12  ;;  %v157_v11 = vperm.slane %v3828_v2, 2  ;;  %v158_v12 = vperm.slane %v3828_v2, 3 }
  0x73   :  { %1301 = vmatpush.bf16.msra.mxu2 %v2794_v27  ;;  %1314 = vmatpush.bf16.msra.mxu3 %v2890_v39  ;;  %v3450_v27 = vld [vmem:[#allocation7 + $0xf4] sm:$0xf]  ;;  %v2606_v39 = vor.u32 %v3423_v36, %v2603_v37  ;;  %v2873_v36 = vld [vmem:[#allocation7 + $0x230] sm:$0xf]  ;;  %v3491_v37 = vld [vmem:[#allocation7 + $0x238] sm:$0xf0] }
  0x74   :  { %v2714_v29 = vor.u32 %v3450_v27, %v2711_v28  ;;  %v2669_v28 = vld [vmem:[#allocation7 + $0x98] sm:$0xf] }
  0x75   :  { %1276 = vmatpush.bf16.msra.mxu0 %v2590_v26  ;;  %1289 = vmatpush.bf16.msra.mxu1 %v2686_v30  ;;  %v2618_v26 = vor.u32 %v3426_v24, %v2615_v25  ;;  %v3477_v30 = vld [vmem:[#allocation7 + $0x1cc] sm:$0xf] }
  0x77   :  { %1302 = vmatpush.bf16.msra.mxu2 %v2782_v42  ;;  %1315 = vmatpush.bf16.msra.mxu3 %v2878_v54  ;;  %v3474_v42 = vld [vmem:[#allocation7 + $0x1b4] sm:$0xf]  ;;  %v3471_v54 = vld [vmem:[#allocation7 + $0x19c] sm:$0xf] }
  0x78   :  { %v2810_v45 = vor.u32 %v3474_v42, %v2807_v43  ;;  %v3515_v42 = vld [vmem:[#allocation7 + $0x2f8] sm:$0xf0]  ;;  %v2657_v43 = vld [vmem:[#allocation7 + $0x80] sm:$0xf] }
  0x79   :  { %1321 = vmatpush.bf16.msrb.mxu0 %v2678_v31  ;;  %1334 = vmatpush.bf16.msrb.mxu1 %v2774_v35  ;;  %v2819_v31 = vld [vmem:[#allocation7 + $0x1d4] sm:$0xf0]  ;;  %v2918_v35 = vor.u32 %v3501_v32, %v2915_v34  ;;  %v3464_v34 = vld [vmem:[#allocation7 + $0x160] sm:$0xf0] }
  0x7a   :  { %v2822_v33 = vor.u32 %v3477_v30, %v2819_v31 }
  0x7b   :  { %1347 = vmatpush.bf16.msrb.mxu2 %v2870_v47  ;;  %1360 = vmatpush.bf16.msrb.mxu3 %v2966_v57  ;;  %v2903_v47 = vld [vmem:[#allocation7 + $0x27c] sm:$0xf0]  ;;  %v2891_v57 = vld [vmem:[#allocation7 + $0x264] sm:$0xf0] }
  0x7d   :  { %1322 = vmatpush.bf16.msrb.mxu0 %v2666_v46  ;;  %1335 = vmatpush.bf16.msrb.mxu1 %v2762_v50  ;;  %v3498_v46 = vld [vmem:[#allocation7 + $0x274] sm:$0xf]  ;;  %v3444_v50 = vld [vmem:[#allocation7 + $0xc4] sm:$0xf] }
  0x7e   :  { %v2906_v48 = vor.u32 %v3498_v46, %v2903_v47  ;;  %v2690_v53 = vor.u32 %v3444_v50, %v2687_v52  ;;  %v2753_v46 = vld [vmem:[#allocation7 + $0x140] sm:$0xf]  ;;  %v3461_v47 = vld [vmem:[#allocation7 + $0x148] sm:$0xf0]  ;;  %v2970_v52 = vor.u32 %v3515_v42, %v2969_v38  ;;  %v2813_v42 = vld [vmem:[#allocation7 + $0x1b8] sm:$0xf] }
  0x7f   :  { %1348 = vmatpush.bf16.msrb.mxu2 %v2858_v59  ;;  %1361 = vmatpush.bf16.msrb.mxu3 %v2954_v5  ;;  %v2894_v59 = vor.u32 %v3495_v56, %v2891_v57  ;;  %v2705_v38 = vld [vmem:[#allocation7 + $0xe0] sm:$0xf] }
  0x81   :  { %1323 = vmatpush.bf16.msrb.mxu0 %v2654_v58  ;;  %1336 = vmatpush.bf16.msrb.mxu1 %v2750_v63  ;;  %v2798_v58 = vor.u32 %v3471_v54, %v2795_v55  ;;  %v3492_v63 = vld [vmem:[#allocation7 + $0x244] sm:$0xf]  ;;  %v2861_v54 = vld [vmem:[#allocation7 + $0x218] sm:$0xf] }
  0x82   :  { %v2882_v1 = vor.u32 %v3492_v63, %v2879_v0  ;;  %v3488_v55 = vld [vmem:[#allocation7 + $0x220] sm:$0xf0]  ;;  %v2741_v63 = vld [vmem:[#allocation7 + $0x128] sm:$0xf]  ;;  %v3458_v0 = vld [vmem:[#allocation7 + $0x130] sm:$0xf0] }
  0x83   :  { %1349 = vmatpush.bf16.msrb.mxu2 %v2846_v7  ;;  %1362 = vmatpush.bf16.msrb.mxu3 %v2942_v15  ;;  %v3443_v15 = vld [vmem:[#allocation7 + $0xb8] sm:$0xf0] }
  0x85   :  { %1324 = vmatpush.bf16.msrb.mxu0 %v2642_v6  ;;  %1337 = vmatpush.bf16.msrb.mxu1 %v2738_v10 }
  0x87   :  { %1350 = vmatpush.bf16.msrb.mxu2 %v2834_v21  ;;  %1363 = vmatpush.bf16.msrb.mxu3 %v2930_v23 }
  0x89   :  { %1325 = vmatpush.bf16.msrb.mxu0 %v2630_v16  ;;  %1338 = vmatpush.bf16.msrb.mxu1 %v2726_v17  ;;  %v2777_v16 = vld [vmem:[#allocation7 + $0x170] sm:$0xf]  ;;  %v3467_v17 = vld [vmem:[#allocation7 + $0x178] sm:$0xf0] }
  0x8a   :  { %v2778_v27 = vor.u32 %v3467_v17, %v2777_v16  ;;  %v2837_v16 = vld [vmem:[#allocation7 + $0x1e8] sm:$0xf]  ;;  %v3482_v17 = vld [vmem:[#allocation7 + $0x1f0] sm:$0xf0] }
  0x8b   :  { %1351 = vmatpush.bf16.msrb.mxu2 %v2822_v33  ;;  %1364 = vmatpush.bf16.msrb.mxu3 %v2918_v35  ;;  %v2765_v33 = vld [vmem:[#allocation7 + $0x158] sm:$0xf] }
  0x8d   :  { %1326 = vmatpush.bf16.msrb.mxu0 %v2618_v26  ;;  %1339 = vmatpush.bf16.msrb.mxu1 %v2714_v29  ;;  %v2682_v26 = vor.u32 %v3443_v15, %v2681_v13  ;;  %v3440_v29 = vld [vmem:[#allocation7 + $0xa0] sm:$0xf0]  ;;  %v3455_v13 = vld [vmem:[#allocation7 + $0x118] sm:$0xf0] }
  0x8e   :  { %v2670_v40 = vor.u32 %v3440_v29, %v2669_v28  ;;  %v2825_v28 = vld [vmem:[#allocation7 + $0x1d0] sm:$0xf]  ;;  %v3479_v29 = vld [vmem:[#allocation7 + $0x1d8] sm:$0xf0] }
  0x8f   :  { %1352 = vmatpush.bf16.msrb.mxu2 %v2810_v45  ;;  %1365 = vmatpush.bf16.msrb.mxu3 %v2906_v48  ;;  %v3437_v45 = vld [vmem:[#allocation7 + $0x88] sm:$0xf0] }
  0x91   :  { %1327 = vmatpush.bf16.msrb.mxu0 %v2606_v39  ;;  %1340 = vmatpush.bf16.msrb.mxu1 %v2702_v41  ;;  %v2766_v41 = vor.u32 %v3464_v34, %v2765_v33  ;;  %v3503_v33 = vld [vmem:[#allocation7 + $0x298] sm:$0xf0] }
  0x93   :  { %1353 = vmatpush.bf16.msrb.mxu2 %v2798_v58  ;;  %1366 = vmatpush.bf16.msrb.mxu3 %v2894_v59  ;;  %v2754_v58 = vor.u32 %v3461_v47, %v2753_v46  ;;  %v2957_v59 = vld [vmem:[#allocation7 + $0x2d8] sm:$0xf]  ;;  %v3500_v46 = vld [vmem:[#allocation7 + $0x280] sm:$0xf0] }
  0x95   :  { %1328 = vmatpush.bf16.msrb.mxu0 %v2594_v51  ;;  %1341 = vmatpush.bf16.msrb.mxu1 %v2690_v53  ;;  %v2874_v51 = vor.u32 %v3491_v37, %v2873_v36  ;;  %v2658_v53 = vor.u32 %v3437_v45, %v2657_v43  ;;  %v2609_v36 = vld [vmem:[#allocation7 + $0x20] sm:$0xf]  ;;  %v3425_v37 = vld [vmem:[#allocation7 + $0x28] sm:$0xf0]  ;;  %v3476_v43 = vld [vmem:[#allocation7 + $0x1c0] sm:$0xf0] }
  0x96   :  { %v2909_v45 = vld [vmem:[#allocation7 + $0x278] sm:$0xf]  ;;  %v2610_v47 = vor.u32 %v3425_v37, %v2609_v36  ;;  %v3607_v36 = vld [vmem:[#allocation7 + $0x5d8] sm:$0xf0] }
  0x97   :  { %1354 = vmatpush.bf16.msrb.mxu2 %v2786_v62  ;;  %1367 = vmatpush.bf16.msrb.mxu3 %v2882_v1  ;;  %v3434_v62 = vld [vmem:[#allocation7 + $0x70] sm:$0xf0]  ;;  %v2862_v1 = vor.u32 %v3488_v55, %v2861_v54  ;;  %v2814_v54 = vor.u32 %v3476_v43, %v2813_v42  ;;  %v2910_v55 = vor.u32 %v3500_v46, %v2909_v45  ;;  %v3553_v42 = vld [vmem:[#allocation7 + $0x428] sm:$0xf0]  ;;  %v3225_v46 = vld [vmem:[#allocation7 + $0x4f8] sm:$0xf] }
  0xb5   :  { %v500_v5 = vpop.f32.mrf.mxu0  ;;  %v513_v7 = vpop.f32.mrf.mxu1 }
  0xb6   :  { %v501_v6 = vadd.f32 %v500_v5, %v155_v3  ;;  %v514_v8 = vadd.f32 %v513_v7, %v156_v4  ;;  %v2958_v3 = vor.u32 %v3512_v60, %v2957_v59  ;;  %v2849_v4 = vld [vmem:[#allocation7 + $0x200] sm:$0xf]  ;;  %v2646_v5 = vor.u32 %v3434_v62, %v2645_v61  ;;  %v3485_v7 = vld [vmem:[#allocation7 + $0x208] sm:$0xf0]  ;;  %v3562_v59 = vld [vmem:[#allocation7 + $0x470] sm:$0xf0] }
  0xb7   :  { %v2801_v60 = vld [vmem:[#allocation7 + $0x1a0] sm:$0xf]  ;;  %v3473_v61 = vld [vmem:[#allocation7 + $0x1a8] sm:$0xf0] }
  0xb8   :  { %v595_v9 = vmax.f32 %v501_v6, 0.0  ;;  %v596_v10 = vmax.f32 %v514_v8, 0.0  ;;  %v2742_v6 = vor.u32 %v3458_v0, %v2741_v63  ;;  %v2945_v8 = vld [vmem:[#allocation7 + $0x2c0] sm:$0xf]  ;;  %v3497_v63 = vld [vmem:[#allocation7 + $0x268] sm:$0xf0] }
  0xb9   :  { %v2897_v62 = vld [vmem:[#allocation7 + $0x260] sm:$0xf] }
  0xba   :  { %v603_v14 = vpack.c.bf16 %v596_v10, %v595_v9  ;;  %v3509_v9 = vld [vmem:[#allocation7 + $0x2c8] sm:$0xf0]  ;;  %v2633_v10 = vld [vmem:[#allocation7 + $0x50] sm:$0xf] }
  0xbb   :  { %v2946_v15 = vor.u32 %v3509_v9, %v2945_v8  ;;  %v2802_v8 = vor.u32 %v3473_v61, %v2801_v60  ;;  %v2898_v9 = vor.u32 %v3497_v63, %v2897_v62  ;;  %v3550_v60 = vld [vmem:[#allocation7 + $0x410] sm:$0xf0]  ;;  %v3213_v63 = vld [vmem:[#allocation7 + $0x4e0] sm:$0xf] }
  0xbc   :  { %v745_v19 = vunpack.c.l.b16 %v603_v14  ;;  %v746_v20 = vunpack.c.h.b16 %v603_v14  ;;  %v2850_v14 = vor.u32 %v3485_v7, %v2849_v4  ;;  %v3141_v7 = vld [vmem:[#allocation7 + $0x450] sm:$0xf] }
  0xbd   :  { %v526_v18 = vpop.f32.mrf.mxu2  ;;  %v539_v22 = vpop.f32.mrf.mxu3 }
  0xbe   :  { %v527_v21 = vadd.f32 %v526_v18, %v157_v11  ;;  %v502_v23 = vpop.f32.mrf.mxu0  ;;  %v540_v24 = vadd.f32 %v539_v22, %v158_v12  ;;  %v515_v25 = vpop.f32.mrf.mxu1  ;;  %v3834_v30 = vpack.c.b16 %v745_v19, %v745_v19  ;;  %v3836_v31 = vpack.c.b16 %v746_v20, %v746_v20  ;;  %v3431_v11 = vld [vmem:[#allocation7 + $0x58] sm:$0xf0]  ;;  %v2729_v12 = vld [vmem:[#allocation7 + $0x110] sm:$0xf]  ;;  %v2933_v18 = vld [vmem:[#allocation7 + $0x2a8] sm:$0xf] }
  0xbf   :  { %v3506_v19 = vld [vmem:[#allocation7 + $0x2b0] sm:$0xf0]  ;;  %v2634_v20 = vor.u32 %v3431_v11, %v2633_v10  ;;  %v2621_v22 = vld [vmem:[#allocation7 + $0x38] sm:$0xf]  ;;  %v3428_v23 = vld [vmem:[#allocation7 + $0x40] sm:$0xf0] }
  0xc0   :  { %v597_v32 = vmax.f32 %v527_v21, 0.0  ;;  %v598_v35 = vmax.f32 %v540_v24, 0.0  ;;  %1277 = vmatmul.bf16.vlgmr.msra.gmra.mxu0 %v3834_v30  ;;  %1290 = vmatmul.bf16.vlgmr.msra.gmra.mxu1 %v3836_v31  ;;  %v2730_v21 = vor.u32 %v3455_v13, %v2729_v12  ;;  %v2717_v24 = vld [vmem:[#allocation7 + $0xf8] sm:$0xf]  ;;  %v3452_v25 = vld [vmem:[#allocation7 + $0x100] sm:$0xf0]  ;;  %v2622_v34 = vor.u32 %v3428_v23, %v2621_v22 }
  0xc1   :  { %1373 = vmatpush.bf16.msra.mxu0 %v2682_v26  ;;  %1386 = vmatpush.bf16.msra.mxu1 %v2778_v27  ;;  %v2838_v26 = vor.u32 %v3482_v17, %v2837_v16  ;;  %v2934_v27 = vor.u32 %v3506_v19, %v2933_v18  ;;  %v3559_v10 = vld [vmem:[#allocation7 + $0x458] sm:$0xf0]  ;;  %v2789_v11 = vld [vmem:[#allocation7 + $0x188] sm:$0xf]  ;;  %v3470_v12 = vld [vmem:[#allocation7 + $0x190] sm:$0xf0] }
  0xc2   :  { %v604_v39 = vpack.c.bf16 %v598_v35, %v597_v32  ;;  %v2921_v32 = vld [vmem:[#allocation7 + $0x290] sm:$0xf]  ;;  %v2718_v35 = vor.u32 %v3452_v25, %v2717_v24  ;;  %v2885_v13 = vld [vmem:[#allocation7 + $0x248] sm:$0xf]  ;;  %v3586_v18 = vld [vmem:[#allocation7 + $0x530] sm:$0xf0]  ;;  %v3142_v22 = vor.u32 %v3559_v10, %v3141_v7  ;;  %v2790_v24 = vor.u32 %v3470_v12, %v2789_v11 }
  0xc3   :  { %v3345_v19 = vld [vmem:[#allocation7 + $0x5e8] sm:$0xf]  ;;  %v3033_v23 = vld [vmem:[#allocation7 + $0x378] sm:$0xf]  ;;  %v3523_v7 = vld [vmem:[#allocation7 + $0x338] sm:$0xf0] }
  0xc4   :  { %v747_v48 = vunpack.c.l.b16 %v604_v39  ;;  %v748_v49 = vunpack.c.h.b16 %v604_v39  ;;  %v3449_v39 = vld [vmem:[#allocation7 + $0xe8] sm:$0xf0] }
  0xc5   :  { %v528_v44 = vpop.f32.mrf.mxu2  ;;  %v541_v50 = vpop.f32.mrf.mxu3  ;;  %1374 = vmatpush.bf16.msra.mxu0 %v2670_v40  ;;  %1387 = vmatpush.bf16.msra.mxu1 %v2766_v41  ;;  %v2826_v40 = vor.u32 %v3479_v29, %v2825_v28  ;;  %v2922_v41 = vor.u32 %v3503_v33, %v2921_v32  ;;  %v3556_v28 = vld [vmem:[#allocation7 + $0x440] sm:$0xf0]  ;;  %v3237_v33 = vld [vmem:[#allocation7 + $0x510] sm:$0xf] }
  0xc6   :  { %v3840_v56 = vpack.c.b16 %v747_v48, %v747_v48  ;;  %v3842_v57 = vpack.c.b16 %v748_v49, %v748_v49  ;;  %v2706_v48 = vor.u32 %v3449_v39, %v2705_v38  ;;  %v2597_v49 = vld [vmem:[#allocation7 + $0x8] sm:$0xf]  ;;  %v3422_v44 = vld [vmem:[#allocation7 + $0x10] sm:$0xf0]  ;;  %v3021_v39 = vld [vmem:[#allocation7 + $0x360] sm:$0xf] }
  0xc7   :  { %v2693_v50 = vld [vmem:[#allocation7 + $0xc8] sm:$0xf]  ;;  %v2598_v0 = vor.u32 %v3422_v44, %v2597_v49  ;;  %v3321_v44 = vld [vmem:[#allocation7 + $0x5b8] sm:$0xf] }
  0xc8   :  { %1303 = vmatmul.bf16.vlgmr.msra.gmra.mxu2 %v3840_v56  ;;  %1316 = vmatmul.bf16.vlgmr.msra.gmra.mxu3 %v3842_v57 }
  0xc9   :  { %1399 = vmatpush.bf16.msra.mxu2 %v2874_v51  ;;  %1412 = vmatpush.bf16.msra.mxu3 %v2970_v52  ;;  %v3446_v51 = vld [vmem:[#allocation7 + $0xd0] sm:$0xf0]  ;;  %v3057_v52 = vld [vmem:[#allocation7 + $0x3a8] sm:$0xf] }
  0xca   :  { %1375 = vmatpush.bf16.msra.mxu0 %v2658_v53  ;;  %1388 = vmatpush.bf16.msra.mxu1 %v2754_v58  ;;  %v3538_v53 = vld [vmem:[#allocation7 + $0x3b0] sm:$0xf0]  ;;  %v3153_v58 = vld [vmem:[#allocation7 + $0x468] sm:$0xf] }
  0xcb   :  { %v3154_v4 = vor.u32 %v3562_v59, %v3153_v58  ;;  %v3526_v58 = vld [vmem:[#allocation7 + $0x350] sm:$0xf0]  ;;  %v3105_v59 = vld [vmem:[#allocation7 + $0x408] sm:$0xf] }
  0xcd   :  { %1400 = vmatpush.bf16.msra.mxu2 %v2862_v1  ;;  %1413 = vmatpush.bf16.msra.mxu3 %v2958_v3  ;;  %v2694_v1 = vor.u32 %v3446_v51, %v2693_v50  ;;  %v3058_v3 = vor.u32 %v3538_v53, %v3057_v52  ;;  %v3604_v50 = vld [vmem:[#allocation7 + $0x5c0] sm:$0xf0]  ;;  %v159_v51 = vperm.slane %v3828_v2, 4  ;;  %v160_v52 = vperm.slane %v3828_v2, 5 }
  0xce   :  { %1376 = vmatpush.bf16.msra.mxu0 %v2646_v5  ;;  %1389 = vmatpush.bf16.msra.mxu1 %v2742_v6  ;;  %v3045_v5 = vld [vmem:[#allocation7 + $0x390] sm:$0xf]  ;;  %v3535_v6 = vld [vmem:[#allocation7 + $0x398] sm:$0xf0]  ;;  %v3322_v62 = vor.u32 %v3604_v50, %v3321_v44 }
  0xd0   :  { %1329 = vmatmul.bf16.vlgmr.msrb.gmra.mxu0 %v3834_v30  ;;  %1342 = vmatmul.bf16.vlgmr.msrb.gmra.mxu1 %v3836_v31 }
  0xd1   :  { %1401 = vmatpush.bf16.msra.mxu2 %v2850_v14  ;;  %1414 = vmatpush.bf16.msra.mxu3 %v2946_v15  ;;  %v3494_v14 = vld [vmem:[#allocation7 + $0x250] sm:$0xf0]  ;;  %v3249_v15 = vld [vmem:[#allocation7 + $0x528] sm:$0xf] }
  0xd2   :  { %1377 = vmatpush.bf16.msra.mxu0 %v2634_v20  ;;  %1390 = vmatpush.bf16.msra.mxu1 %v2730_v21  ;;  %v3610_v20 = vld [vmem:[#allocation7 + $0x5f0] sm:$0xf0]  ;;  %v3046_v21 = vor.u32 %v3535_v6, %v3045_v5  ;;  %v2886_v25 = vor.u32 %v3494_v14, %v2885_v13  ;;  %v3250_v29 = vor.u32 %v3586_v18, %v3249_v15  ;;  %v3201_v14 = vld [vmem:[#allocation7 + $0x4c8] sm:$0xf] }
  0xd3   :  { %v3346_v32 = vor.u32 %v3610_v20, %v3345_v19  ;;  %v3106_v6 = vor.u32 %v3550_v60, %v3105_v59  ;;  %v3574_v15 = vld [vmem:[#allocation7 + $0x4d0] sm:$0xf0]  ;;  %v3297_v18 = vld [vmem:[#allocation7 + $0x588] sm:$0xf] }
  0xd4   :  { %v3598_v19 = vld [vmem:[#allocation7 + $0x590] sm:$0xf0] }
  0xd5   :  { %1402 = vmatpush.bf16.msra.mxu2 %v2838_v26  ;;  %1415 = vmatpush.bf16.msra.mxu3 %v2934_v27  ;;  %v3850_v16 = vpop.f32.mrf.mxu0  ;;  %v3852_v17 = vpop.f32.mrf.mxu1  ;;  %v3532_v26 = vld [vmem:[#allocation7 + $0x380] sm:$0xf0]  ;;  %v3129_v27 = vld [vmem:[#allocation7 + $0x438] sm:$0xf] }
  0xd6   :  { %1378 = vmatpush.bf16.msra.mxu0 %v2622_v34  ;;  %1391 = vmatpush.bf16.msra.mxu1 %v2718_v35  ;;  %v3583_v34 = vld [vmem:[#allocation7 + $0x518] sm:$0xf0]  ;;  %v3333_v35 = vld [vmem:[#allocation7 + $0x5d0] sm:$0xf]  ;;  %v3034_v37 = vor.u32 %v3532_v26, %v3033_v23  ;;  %v3130_v38 = vor.u32 %v3556_v28, %v3129_v27  ;;  %v566_v5 = vadd.f32 %v3852_v17, %v160_v52  ;;  %v162_v17 = vperm.slane %v3828_v2, 7 }
  0xd7   :  { %v3334_v45 = vor.u32 %v3607_v36, %v3333_v35  ;;  %v3520_v26 = vld [vmem:[#allocation7 + $0x320] sm:$0xf0]  ;;  %v3081_v27 = vld [vmem:[#allocation7 + $0x3d8] sm:$0xf]  ;;  %v3285_v35 = vld [vmem:[#allocation7 + $0x570] sm:$0xf] }
  0xd8   :  { %1355 = vmatmul.bf16.vlgmr.msrb.gmra.mxu2 %v3840_v56  ;;  %1368 = vmatmul.bf16.vlgmr.msrb.gmra.mxu3 %v3842_v57  ;;  %v3544_v28 = vld [vmem:[#allocation7 + $0x3e0] sm:$0xf0]  ;;  %v3595_v36 = vld [vmem:[#allocation7 + $0x578] sm:$0xf0]  ;;  %v3273_v52 = vld [vmem:[#allocation7 + $0x558] sm:$0xf] }
  0xd9   :  { %1403 = vmatpush.bf16.msra.mxu2 %v2826_v40  ;;  %1416 = vmatpush.bf16.msra.mxu3 %v2922_v41  ;;  %v3529_v40 = vld [vmem:[#allocation7 + $0x368] sm:$0xf0]  ;;  %v3117_v41 = vld [vmem:[#allocation7 + $0x420] sm:$0xf] }
  0xda   :  { %1379 = vmatpush.bf16.msra.mxu0 %v2610_v47  ;;  %1392 = vmatpush.bf16.msra.mxu1 %v2706_v48  ;;  %v3580_v47 = vld [vmem:[#allocation7 + $0x500] sm:$0xf0]  ;;  %v3022_v53 = vor.u32 %v3529_v40, %v3021_v39  ;;  %v3082_v40 = vor.u32 %v3544_v28, %v3081_v27  ;;  %v3239_v27 = vld [vmem:[#allocation7 + $0x51c] sm:$0xf0]  ;;  %v3606_v28 = vld [vmem:[#allocation7 + $0x5d4] sm:$0xf] }
  0xdb   :  { %v3226_v61 = vor.u32 %v3580_v47, %v3225_v46  ;;  %v3059_v46 = vld [vmem:[#allocation7 + $0x3b4] sm:$0xf0]  ;;  %v3561_v47 = vld [vmem:[#allocation7 + $0x46c] sm:$0xf] }
  0xdd   :  { %1404 = vmatpush.bf16.msra.mxu2 %v2814_v54  ;;  %1417 = vmatpush.bf16.msra.mxu3 %v2910_v55  ;;  %v3856_v43 = vpop.f32.mrf.mxu2  ;;  %v554_v48 = vpop.f32.mrf.mxu0  ;;  %v3118_v54 = vor.u32 %v3553_v42, %v3117_v41  ;;  %v3009_v55 = vld [vmem:[#allocation7 + $0x348] sm:$0xf]  ;;  %v3517_v41 = vld [vmem:[#allocation7 + $0x308] sm:$0xf0]  ;;  %v3069_v42 = vld [vmem:[#allocation7 + $0x3c0] sm:$0xf] }
  0xde   :  { %1380 = vmatpush.bf16.msra.mxu0 %v2598_v0  ;;  %1393 = vmatpush.bf16.msra.mxu1 %v2694_v1  ;;  %v567_v49 = vpop.f32.mrf.mxu1  ;;  %v3577_v0 = vld [vmem:[#allocation7 + $0x4e8] sm:$0xf0]  ;;  %v3309_v1 = vld [vmem:[#allocation7 + $0x5a0] sm:$0xf] }
  0xdf   :  { %v3214_v12 = vor.u32 %v3577_v0, %v3213_v63  ;;  %v3155_v49 = vld [vmem:[#allocation7 + $0x474] sm:$0xf0]  ;;  %v3047_v63 = vld [vmem:[#allocation7 + $0x39c] sm:$0xf0]  ;;  %v3558_v0 = vld [vmem:[#allocation7 + $0x454] sm:$0xf] }
  0xe1   :  { %1405 = vmatpush.bf16.msra.mxu2 %v2802_v8  ;;  %1418 = vmatpush.bf16.msra.mxu3 %v2898_v9  ;;  %v3093_v8 = vld [vmem:[#allocation7 + $0x3f0] sm:$0xf]  ;;  %v3547_v9 = vld [vmem:[#allocation7 + $0x3f8] sm:$0xf0] }
  0xe2   :  { %2092 = vmatpush.bf16.msrb.mxu0 %v3058_v3  ;;  %2105 = vmatpush.bf16.msrb.mxu1 %v3154_v4  ;;  %v3601_v3 = vld [vmem:[#allocation7 + $0x5a8] sm:$0xf0]  ;;  %v553_v4 = vadd.f32 %v3850_v16, %v159_v51  ;;  %v161_v16 = vperm.slane %v3828_v2, 6  ;;  %v3094_v23 = vor.u32 %v3547_v9, %v3093_v8  ;;  %v3568_v51 = vld [vmem:[#allocation7 + $0x4a0] sm:$0xf0] }
  0xe3   :  { %1381 = vmatmul.bf16.vlgmr.msra.gmra.mxu0 %v3834_v30  ;;  %1394 = vmatmul.bf16.vlgmr.msra.gmra.mxu1 %v3836_v31  ;;  %v3858_v30 = vpop.f32.mrf.mxu3  ;;  %v3238_v31 = vor.u32 %v3583_v34, %v3237_v33  ;;  %v3310_v13 = vor.u32 %v3601_v3, %v3309_v1  ;;  %v3571_v33 = vld [vmem:[#allocation7 + $0x4b8] sm:$0xf0]  ;;  %v3261_v8 = vld [vmem:[#allocation7 + $0x540] sm:$0xf]  ;;  %v3589_v9 = vld [vmem:[#allocation7 + $0x548] sm:$0xf0] }
  0xe4   :  { %v599_v20 = vmax.f32 %v553_v4, 0.0  ;;  %v579_v2 = vadd.f32 %v3856_v43, %v161_v16  ;;  %v592_v34 = vadd.f32 %v3858_v30, %v162_v17  ;;  %v3286_v43 = vor.u32 %v3595_v36, %v3285_v35  ;;  %v3177_v30 = vld [vmem:[#allocation7 + $0x498] sm:$0xf]  ;;  %v3143_v4 = vld [vmem:[#allocation7 + $0x45c] sm:$0xf0] }
  0xe5   :  { %1406 = vmatpush.bf16.msra.mxu2 %v2790_v24  ;;  %1419 = vmatpush.bf16.msra.mxu3 %v2886_v25  ;;  %v580_v10 = vpop.f32.mrf.mxu2  ;;  %v2985_v24 = vld [vmem:[#allocation7 + $0x318] sm:$0xf]  ;;  %v3202_v25 = vor.u32 %v3574_v15, %v3201_v14  ;;  %v3178_v1 = vor.u32 %v3568_v51, %v3177_v30  ;;  %v3146_v15 = vor.u32 %v3558_v0, %v3143_v4  ;;  %v3531_v16 = vld [vmem:[#allocation7 + $0x37c] sm:$0xf]  ;;  %v3023_v36 = vld [vmem:[#allocation7 + $0x36c] sm:$0xf0] }
  0xe6   :  { %2093 = vmatpush.bf16.msrb.mxu0 %v3046_v21  ;;  %2106 = vmatpush.bf16.msrb.mxu1 %v3142_v22  ;;  %v600_v21 = vmax.f32 %v566_v5, 0.0  ;;  %v2986_v39 = vor.u32 %v3520_v26, %v2985_v24  ;;  %v601_v44 = vmax.f32 %v579_v2, 0.0  ;;  %v602_v50 = vmax.f32 %v592_v34, 0.0  ;;  %v3165_v5 = vld [vmem:[#allocation7 + $0x480] sm:$0xf] }
  0xe7   :  { %v3585_v10 = vld [vmem:[#allocation7 + $0x52c] sm:$0xf]  ;;  %v3582_v26 = vld [vmem:[#allocation7 + $0x514] sm:$0xf]  ;;  %v3528_v2 = vld [vmem:[#allocation7 + $0x364] sm:$0xf] }
  0xe8   :  { %1407 = vmatmul.bf16.vlgmr.msra.gmra.mxu2 %v3840_v56  ;;  %1420 = vmatmul.bf16.vlgmr.msra.gmra.mxu3 %v3842_v57  ;;  %v3010_v56 = vor.u32 %v3526_v58, %v3009_v55  ;;  %v2997_v57 = vld [vmem:[#allocation7 + $0x330] sm:$0xf]  ;;  %v3107_v30 = vld [vmem:[#allocation7 + $0x414] sm:$0xf0]  ;;  %v3576_v51 = vld [vmem:[#allocation7 + $0x4e4] sm:$0xf] }
  0xe9   :  { %2118 = vmatpush.bf16.msrb.mxu2 %v3250_v29  ;;  %2131 = vmatpush.bf16.msrb.mxu3 %v3346_v32  ;;  %v2998_v22 = vor.u32 %v3523_v7, %v2997_v57  ;;  %v3298_v29 = vor.u32 %v3598_v19, %v3297_v18  ;;  %v3189_v32 = vld [vmem:[#allocation7 + $0x4b0] sm:$0xf]  ;;  %v3262_v18 = vor.u32 %v3589_v9, %v3261_v8  ;;  %v3035_v19 = vld [vmem:[#allocation7 + $0x384] sm:$0xf0]  ;;  %v3597_v4 = vld [vmem:[#allocation7 + $0x58c] sm:$0xf] }
  0xea   :  { %2094 = vmatpush.bf16.msrb.mxu0 %v3034_v37  ;;  %2107 = vmatpush.bf16.msrb.mxu1 %v3130_v38  ;;  %v2973_v37 = vld [vmem:[#allocation7 + $0x300] sm:$0xf]  ;;  %v605_v38 = vpack.c.bf16 %v600_v21, %v599_v20  ;;  %v3190_v48 = vor.u32 %v3571_v33, %v3189_v32  ;;  %v3555_v20 = vld [vmem:[#allocation7 + $0x43c] sm:$0xf]  ;;  %v3131_v21 = vld [vmem:[#allocation7 + $0x444] sm:$0xf0]  ;;  %v3038_v32 = vor.u32 %v3531_v16, %v3035_v19 }
  0xeb   :  { %v593_v11 = vpop.f32.mrf.mxu3  ;;  %v2974_v58 = vor.u32 %v3517_v41, %v2973_v37  ;;  %v3134_v33 = vor.u32 %v3555_v20, %v3131_v21  ;;  %v3552_v37 = vld [vmem:[#allocation7 + $0x424] sm:$0xf]  ;;  %v3579_v41 = vld [vmem:[#allocation7 + $0x4fc] sm:$0xf]  ;;  %v2987_v9 = vld [vmem:[#allocation7 + $0x324] sm:$0xf0] }
  0xec   :  { %v1569_v55 = vunpack.c.h.b16 %v605_v38  ;;  %v3251_v11 = vld [vmem:[#allocation7 + $0x534] sm:$0xf0]  ;;  %v3519_v8 = vld [vmem:[#allocation7 + $0x31c] sm:$0xf]  ;;  %v3594_v16 = vld [vmem:[#allocation7 + $0x574] sm:$0xf] }
  0xed   :  { %2119 = vmatpush.bf16.msrb.mxu2 %v3238_v31  ;;  %2132 = vmatpush.bf16.msrb.mxu3 %v3334_v45  ;;  %v3541_v31 = vld [vmem:[#allocation7 + $0x3c8] sm:$0xf0]  ;;  %v3254_v24 = vor.u32 %v3585_v10, %v3251_v11  ;;  %v3543_v10 = vld [vmem:[#allocation7 + $0x3dc] sm:$0xf]  ;;  %v3083_v11 = vld [vmem:[#allocation7 + $0x3e4] sm:$0xf0] }
  0xee   :  { %2095 = vmatpush.bf16.msrb.mxu0 %v3022_v53  ;;  %2108 = vmatpush.bf16.msrb.mxu1 %v3118_v54  ;;  %v3537_v45 = vld [vmem:[#allocation7 + $0x3ac] sm:$0xf]  ;;  %v3592_v53 = vld [vmem:[#allocation7 + $0x560] sm:$0xf0]  ;;  %v1568_v54 = vunpack.c.l.b16 %v605_v38  ;;  %v3070_v59 = vor.u32 %v3541_v31, %v3069_v42  ;;  %v3872_v7 = vpack.c.b16 %v1569_v55, %v1569_v55  ;;  %v3119_v38 = vld [vmem:[#allocation7 + $0x42c] sm:$0xf0]  ;;  %v3086_v19 = vor.u32 %v3543_v10, %v3083_v11 }
  0xef   :  { %v3062_v60 = vor.u32 %v3537_v45, %v3059_v46  ;;  %v3274_v3 = vor.u32 %v3592_v53, %v3273_v52  ;;  %v3227_v42 = vld [vmem:[#allocation7 + $0x504] sm:$0xf0]  ;;  %v3603_v31 = vld [vmem:[#allocation7 + $0x5bc] sm:$0xf]  ;;  %v3026_v46 = vor.u32 %v3528_v2, %v3023_v36  ;;  %v3215_v52 = vld [vmem:[#allocation7 + $0x4ec] sm:$0xf0] }
  0xf0   :  { %v3870_v57 = vpack.c.b16 %v1568_v54, %v1568_v54  ;;  %v3323_v45 = vld [vmem:[#allocation7 + $0x5c4] sm:$0xf0]  ;;  %v3600_v53 = vld [vmem:[#allocation7 + $0x5a4] sm:$0xf]  ;;  %v3311_v54 = vld [vmem:[#allocation7 + $0x5ac] sm:$0xf0] }
  0xf1   :  { %2120 = vmatpush.bf16.msrb.mxu2 %v3226_v61  ;;  %2133 = vmatpush.bf16.msrb.mxu3 %v3322_v62  ;;  %v3158_v61 = vor.u32 %v3561_v47, %v3155_v49  ;;  %v3534_v62 = vld [vmem:[#allocation7 + $0x394] sm:$0xf]  ;;  %v3122_v47 = vor.u32 %v3552_v37, %v3119_v38  ;;  %v3549_v49 = vld [vmem:[#allocation7 + $0x40c] sm:$0xf]  ;;  %v3314_v0 = vor.u32 %v3600_v53, %v3311_v54  ;;  %v3516_v20 = vld [vmem:[#allocation7 + $0x304] sm:$0xf] }
  0xf2   :  { %2096 = vmatpush.bf16.msrb.mxu0 %v3010_v56  ;;  %2109 = vmatpush.bf16.msrb.mxu1 %v3106_v6  ;;  %v3565_v56 = vld [vmem:[#allocation7 + $0x488] sm:$0xf0]  ;;  %v606_v6 = vpack.c.bf16 %v602_v50, %v601_v44  ;;  %v3050_v14 = vor.u32 %v3534_v62, %v3047_v63  ;;  %v3230_v44 = vor.u32 %v3579_v41, %v3227_v42  ;;  %v3095_v62 = vld [vmem:[#allocation7 + $0x3fc] sm:$0xf0]  ;;  %v2975_v21 = vld [vmem:[#allocation7 + $0x30c] sm:$0xf0] }
  0xf3   :  { %v3166_v17 = vor.u32 %v3565_v56, %v3165_v5  ;;  %v3326_v50 = vor.u32 %v3603_v31, %v3323_v45  ;;  %v3218_v63 = vor.u32 %v3576_v51, %v3215_v52  ;;  %v3299_v5 = vld [vmem:[#allocation7 + $0x594] sm:$0xf0]  ;;  %v3591_v2 = vld [vmem:[#allocation7 + $0x55c] sm:$0xf]  ;;  %v3275_v36 = vld [vmem:[#allocation7 + $0x564] sm:$0xf0]  ;;  %v2978_v37 = vor.u32 %v3516_v20, %v2975_v21 }
  0xf4   :  { %v3053_v41 = vld [vmem:[#allocation7 + $0x398] sm:$0xf]  ;;  %v3536_v42 = vld [vmem:[#allocation7 + $0x3a0] sm:$0xf0]  ;;  %v3353_v51 = vld [vmem:[#allocation7 + $0x5f0] sm:$0xf] }
  0xf5   :  { %2121 = vmatpush.bf16.msrb.mxu2 %v3214_v12  ;;  %2134 = vmatpush.bf16.msrb.mxu3 %v3310_v13  ;;  %v3609_v12 = vld [vmem:[#allocation7 + $0x5ec] sm:$0xf]  ;;  %v3347_v13 = vld [vmem:[#allocation7 + $0x5f4] sm:$0xf0]  ;;  %v3611_v52 = vld [vmem:[#allocation7 + $0x5f8] sm:$0xf0]  ;;  %v3054_v53 = vor.u32 %v3536_v42, %v3053_v41 }
  0xf6   :  { %2097 = vmatpush.bf16.msrb.mxu0 %v2998_v22  ;;  %2110 = vmatpush.bf16.msrb.mxu1 %v3094_v23  ;;  %v1570_v22 = vunpack.c.l.b16 %v606_v6  ;;  %v1571_v23 = vunpack.c.h.b16 %v606_v6  ;;  %v3149_v31 = vld [vmem:[#allocation7 + $0x458] sm:$0xf]  ;;  %v3017_v20 = vld [vmem:[#allocation7 + $0x350] sm:$0xf]  ;;  %v3527_v21 = vld [vmem:[#allocation7 + $0x358] sm:$0xf0] }
  0xf7   :  { %v3209_v41 = vld [vmem:[#allocation7 + $0x4d0] sm:$0xf]  ;;  %v3575_v42 = vld [vmem:[#allocation7 + $0x4d8] sm:$0xf0] }
  0xf8   :  { %v3876_v34 = vpack.c.b16 %v1570_v22, %v1570_v22  ;;  %v3878_v35 = vpack.c.b16 %v1571_v23, %v1571_v23  ;;  %v3540_v22 = vld [vmem:[#allocation7 + $0x3c4] sm:$0xf]  ;;  %v3071_v23 = vld [vmem:[#allocation7 + $0x3cc] sm:$0xf0] }
  0xf9   :  { %2122 = vmatpush.bf16.msrb.mxu2 %v3202_v25  ;;  %2135 = vmatpush.bf16.msrb.mxu3 %v3298_v29  ;;  %v3350_v25 = vor.u32 %v3609_v12, %v3347_v13  ;;  %v3335_v29 = vld [vmem:[#allocation7 + $0x5dc] sm:$0xf0]  ;;  %v3302_v13 = vor.u32 %v3597_v4, %v3299_v5  ;;  %v3074_v38 = vor.u32 %v3540_v22, %v3071_v23  ;;  %v3341_v4 = vld [vmem:[#allocation7 + $0x5d8] sm:$0xf]  ;;  %v3608_v5 = vld [vmem:[#allocation7 + $0x5e0] sm:$0xf0] }
  0xfa   :  { %2098 = vmatpush.bf16.msrb.mxu0 %v2986_v39  ;;  %2111 = vmatpush.bf16.msrb.mxu1 %v3082_v40  ;;  %v3242_v39 = vor.u32 %v3582_v26, %v3239_v27  ;;  %v3338_v40 = vor.u32 %v3606_v28, %v3335_v29  ;;  %v3161_v28 = vld [vmem:[#allocation7 + $0x470] sm:$0xf]  ;;  %v3563_v29 = vld [vmem:[#allocation7 + $0x478] sm:$0xf0]  ;;  %v3342_v11 = vor.u32 %v3608_v5, %v3341_v4  ;;  %v3281_v4 = vld [vmem:[#allocation7 + $0x560] sm:$0xf] }
  0xfb   :  { %v3593_v5 = vld [vmem:[#allocation7 + $0x568] sm:$0xf0] }
  0xfd   :  { %2123 = vmatpush.bf16.msrb.mxu2 %v3190_v48  ;;  %2136 = vmatpush.bf16.msrb.mxu3 %v3286_v43  ;;  %v3525_v48 = vld [vmem:[#allocation7 + $0x34c] sm:$0xf]  ;;  %v3011_v43 = vld [vmem:[#allocation7 + $0x354] sm:$0xf0] }
  0xfe   :  { %2099 = vmatpush.bf16.msrb.mxu0 %v2974_v58  ;;  %2112 = vmatpush.bf16.msrb.mxu1 %v3070_v59  ;;  %v3014_v55 = vor.u32 %v3525_v48, %v3011_v43  ;;  %v3110_v58 = vor.u32 %v3549_v49, %v3107_v30  ;;  %v3522_v59 = vld [vmem:[#allocation7 + $0x334] sm:$0xf]  ;;  %v3564_v48 = vld [vmem:[#allocation7 + $0x484] sm:$0xf]  ;;  %v3167_v43 = vld [vmem:[#allocation7 + $0x48c] sm:$0xf0] }
  0xff   :  { %v3588_v49 = vld [vmem:[#allocation7 + $0x544] sm:$0xf]  ;;  %v3263_v30 = vld [vmem:[#allocation7 + $0x54c] sm:$0xf0] }
 0x101   :  { %2124 = vmatpush.bf16.msrb.mxu2 %v3178_v1  ;;  %2137 = vmatpush.bf16.msrb.mxu3 %v3274_v3  ;;  %v3573_v1 = vld [vmem:[#allocation7 + $0x4cc] sm:$0xf]  ;;  %v3203_v3 = vld [vmem:[#allocation7 + $0x4d4] sm:$0xf0] }
 0x102   :  { %2144 = vmatpush.bf16.msra.mxu0 %v3062_v60  ;;  %2157 = vmatpush.bf16.msra.mxu1 %v3158_v61  ;;  %v2999_v60 = vld [vmem:[#allocation7 + $0x33c] sm:$0xf0]  ;;  %v3546_v61 = vld [vmem:[#allocation7 + $0x3f4] sm:$0xf]  ;;  %v3206_v12 = vor.u32 %v3573_v1, %v3203_v3  ;;  %v3245_v1 = vld [vmem:[#allocation7 + $0x518] sm:$0xf] }
 0x103   :  { %2100 = vmatmul.bf16.vlgmr.msrb.gmra.mxu0 %v3870_v57  ;;  %2113 = vmatmul.bf16.vlgmr.msrb.gmra.mxu1 %v3872_v7  ;;  %v3002_v56 = vor.u32 %v3522_v59, %v2999_v60  ;;  %v3098_v6 = vor.u32 %v3546_v61, %v3095_v62  ;;  %v3041_v59 = vld [vmem:[#allocation7 + $0x380] sm:$0xf]  ;;  %v3533_v60 = vld [vmem:[#allocation7 + $0x388] sm:$0xf0]  ;;  %v3354_v62 = vor.u32 %v3611_v52, %v3353_v51  ;;  %v3584_v3 = vld [vmem:[#allocation7 + $0x520] sm:$0xf0] }
 0x104   :  { %v3246_v10 = vor.u32 %v3584_v3, %v3245_v1  ;;  %v3197_v51 = vld [vmem:[#allocation7 + $0x4b8] sm:$0xf]  ;;  %v3572_v52 = vld [vmem:[#allocation7 + $0x4c0] sm:$0xf0]  ;;  %v3185_v1 = vld [vmem:[#allocation7 + $0x4a0] sm:$0xf] }
 0x105   :  { %2125 = vmatpush.bf16.msrb.mxu2 %v3166_v17  ;;  %2138 = vmatpush.bf16.msrb.mxu3 %v3262_v18  ;;  %v3287_v17 = vld [vmem:[#allocation7 + $0x57c] sm:$0xf0]  ;;  %v2990_v18 = vor.u32 %v3519_v8, %v2987_v9  ;;  %v3029_v8 = vld [vmem:[#allocation7 + $0x368] sm:$0xf]  ;;  %v3530_v9 = vld [vmem:[#allocation7 + $0x370] sm:$0xf0] }
 0x106   :  { %2145 = vmatpush.bf16.msra.mxu0 %v3050_v14  ;;  %2158 = vmatpush.bf16.msra.mxu1 %v3146_v15  ;;  %v3570_v14 = vld [vmem:[#allocation7 + $0x4b4] sm:$0xf]  ;;  %v3191_v15 = vld [vmem:[#allocation7 + $0x4bc] sm:$0xf0]  ;;  %v3290_v27 = vor.u32 %v3594_v16, %v3287_v17  ;;  %v3605_v17 = vld [vmem:[#allocation7 + $0x5c8] sm:$0xf0] }
 0x107   :  { %v3194_v26 = vor.u32 %v3570_v14, %v3191_v15  ;;  %v3233_v14 = vld [vmem:[#allocation7 + $0x500] sm:$0xf]  ;;  %v3581_v15 = vld [vmem:[#allocation7 + $0x508] sm:$0xf0] }
 0x108   :  { %2126 = vmatmul.bf16.vlgmr.msrb.gmra.mxu2 %v3876_v34  ;;  %2139 = vmatmul.bf16.vlgmr.msrb.gmra.mxu3 %v3878_v35  ;;  %v3329_v16 = vld [vmem:[#allocation7 + $0x5c0] sm:$0xf]  ;;  %v3234_v22 = vor.u32 %v3581_v15, %v3233_v14  ;;  %v3569_v3 = vld [vmem:[#allocation7 + $0x4a8] sm:$0xf0] }
 0x109   :  { %2170 = vmatpush.bf16.msra.mxu2 %v3254_v24  ;;  %2183 = vmatpush.bf16.msra.mxu3 %v3350_v25  ;;  %v3065_v24 = vld [vmem:[#allocation7 + $0x3b0] sm:$0xf]  ;;  %v3539_v25 = vld [vmem:[#allocation7 + $0x3b8] sm:$0xf0]  ;;  %v3330_v23 = vor.u32 %v3605_v17, %v3329_v16  ;;  %v735_v16 = vld [vmem:[#allocation8] sm:$0x7] }
 0x10a   :  { %2146 = vmatpush.bf16.msra.mxu0 %v3038_v32  ;;  %2159 = vmatpush.bf16.msra.mxu1 %v3134_v33  ;;  %v3567_v32 = vld [vmem:[#allocation7 + $0x49c] sm:$0xf]  ;;  %v3179_v33 = vld [vmem:[#allocation7 + $0x4a4] sm:$0xf0]  ;;  %v737_v17 = vperm.slane %v735_v16, 0 }
 0x10b   :  { %v3182_v45 = vor.u32 %v3567_v32, %v3179_v33  ;;  %v3018_v32 = vor.u32 %v3527_v21, %v3017_v20 }
 0x10d   :  { %2171 = vmatpush.bf16.msra.mxu2 %v3242_v39  ;;  %2184 = vmatpush.bf16.msra.mxu3 %v3338_v40  ;;  %v3066_v39 = vor.u32 %v3539_v25, %v3065_v24  ;;  %v3162_v40 = vor.u32 %v3563_v29, %v3161_v28  ;;  %v3113_v24 = vld [vmem:[#allocation7 + $0x410] sm:$0xf]  ;;  %v3551_v25 = vld [vmem:[#allocation7 + $0x418] sm:$0xf0]  ;;  %v3317_v28 = vld [vmem:[#allocation7 + $0x5a8] sm:$0xf] }
 0x10e   :  { %2147 = vmatpush.bf16.msra.mxu0 %v3026_v46  ;;  %2160 = vmatpush.bf16.msra.mxu1 %v3122_v47  ;;  %v3278_v46 = vor.u32 %v3591_v2, %v3275_v36  ;;  %v3560_v47 = vld [vmem:[#allocation7 + $0x460] sm:$0xf0]  ;;  %v3602_v29 = vld [vmem:[#allocation7 + $0x5b0] sm:$0xf0]  ;;  %v3114_v33 = vor.u32 %v3551_v25, %v3113_v24  ;;  %v3005_v2 = vld [vmem:[#allocation7 + $0x338] sm:$0xf] }
 0x10f   :  { %v3150_v54 = vor.u32 %v3560_v47, %v3149_v31  ;;  %v3524_v36 = vld [vmem:[#allocation7 + $0x340] sm:$0xf0]  ;;  %v3305_v31 = vld [vmem:[#allocation7 + $0x590] sm:$0xf] }
 0x111   :  { %2172 = vmatpush.bf16.msra.mxu2 %v3230_v44  ;;  %2185 = vmatpush.bf16.msra.mxu3 %v3326_v50  ;;  %v3257_v44 = vld [vmem:[#allocation7 + $0x530] sm:$0xf]  ;;  %v3587_v50 = vld [vmem:[#allocation7 + $0x538] sm:$0xf0] }
 0x112   :  { %2148 = vmatpush.bf16.msra.mxu0 %v3014_v55  ;;  %2161 = vmatpush.bf16.msra.mxu1 %v3110_v58  ;;  %v3170_v55 = vor.u32 %v3564_v48, %v3167_v43  ;;  %v3266_v58 = vor.u32 %v3588_v49, %v3263_v30  ;;  %v3258_v61 = vor.u32 %v3587_v50, %v3257_v44  ;;  %v2993_v48 = vld [vmem:[#allocation7 + $0x320] sm:$0xf]  ;;  %v3521_v43 = vld [vmem:[#allocation7 + $0x328] sm:$0xf0] }
 0x113   :  { %v3210_v49 = vor.u32 %v3575_v42, %v3209_v41  ;;  %v3089_v44 = vld [vmem:[#allocation7 + $0x3e0] sm:$0xf]  ;;  %v3545_v50 = vld [vmem:[#allocation7 + $0x3e8] sm:$0xf0] }
 0x115   :  { %2173 = vmatpush.bf16.msra.mxu2 %v3218_v63  ;;  %2186 = vmatpush.bf16.msra.mxu3 %v3314_v0  ;;  %v3137_v63 = vld [vmem:[#allocation7 + $0x440] sm:$0xf]  ;;  %v3557_v0 = vld [vmem:[#allocation7 + $0x448] sm:$0xf0] }
 0x116   :  { %2149 = vmatpush.bf16.msra.mxu0 %v3002_v56  ;;  %2162 = vmatpush.bf16.msra.mxu1 %v3098_v6  ;;  %v3042_v56 = vor.u32 %v3533_v60, %v3041_v59  ;;  %v3138_v6 = vor.u32 %v3557_v0, %v3137_v63  ;;  %v2981_v59 = vld [vmem:[#allocation7 + $0x308] sm:$0xf]  ;;  %v3518_v60 = vld [vmem:[#allocation7 + $0x310] sm:$0xf0] }
 0x117   :  { %v3077_v63 = vld [vmem:[#allocation7 + $0x3c8] sm:$0xf]  ;;  %v3542_v0 = vld [vmem:[#allocation7 + $0x3d0] sm:$0xf0] }
 0x119   :  { %2174 = vmatpush.bf16.msra.mxu2 %v3206_v12  ;;  %2187 = vmatpush.bf16.msra.mxu3 %v3302_v13  ;;  %v3125_v12 = vld [vmem:[#allocation7 + $0x428] sm:$0xf]  ;;  %v3554_v13 = vld [vmem:[#allocation7 + $0x430] sm:$0xf0] }
 0x11a   :  { %2150 = vmatpush.bf16.msra.mxu0 %v2990_v18  ;;  %2163 = vmatpush.bf16.msra.mxu1 %v3086_v19  ;;  %v3030_v18 = vor.u32 %v3530_v9, %v3029_v8  ;;  %v3126_v19 = vor.u32 %v3554_v13, %v3125_v12  ;;  %v3186_v8 = vor.u32 %v3569_v3, %v3185_v1  ;;  %v3269_v12 = vld [vmem:[#allocation7 + $0x548] sm:$0xf]  ;;  %v3590_v13 = vld [vmem:[#allocation7 + $0x550] sm:$0xf0] }
 0x11b   :  { %v3282_v9 = vor.u32 %v3593_v5, %v3281_v4  ;;  %v3270_v15 = vor.u32 %v3590_v13, %v3269_v12 }
 0x11d   :  { %2175 = vmatpush.bf16.msra.mxu2 %v3194_v26  ;;  %2188 = vmatpush.bf16.msra.mxu3 %v3290_v27  ;;  %v3221_v26 = vld [vmem:[#allocation7 + $0x4e8] sm:$0xf]  ;;  %v3578_v27 = vld [vmem:[#allocation7 + $0x4f0] sm:$0xf0] }
 0x11e   :  { %2151 = vmatpush.bf16.msra.mxu0 %v2978_v37  ;;  %2164 = vmatpush.bf16.msra.mxu1 %v3074_v38  ;;  %v3222_v37 = vor.u32 %v3578_v27, %v3221_v26  ;;  %v3318_v38 = vor.u32 %v3602_v29, %v3317_v28  ;;  %v738_v27 = vperm.slane %v735_v16, 1 }
 0x121   :  { %2176 = vmatpush.bf16.msra.mxu2 %v3182_v45  ;;  %2189 = vmatpush.bf16.msra.mxu3 %v3278_v46  ;;  %v3599_v45 = vld [vmem:[#allocation7 + $0x598] sm:$0xf0]  ;;  %v3006_v46 = vor.u32 %v3524_v36, %v3005_v2 }
 0x122   :  { %2196 = vmatpush.bf16.msrb.mxu0 %v3066_v39  ;;  %2209 = vmatpush.bf16.msrb.mxu1 %v3162_v40  ;;  %v3101_v39 = vld [vmem:[#allocation7 + $0x3f8] sm:$0xf]  ;;  %v3548_v40 = vld [vmem:[#allocation7 + $0x400] sm:$0xf0]  ;;  %v3306_v30 = vor.u32 %v3599_v45, %v3305_v31 }
 0x123   :  { %2152 = vmatmul.bf16.vlgmr.msra.gmra.mxu0 %v3870_v57  ;;  %2165 = vmatmul.bf16.vlgmr.msra.gmra.mxu1 %v3872_v7  ;;  %v3102_v47 = vor.u32 %v3548_v40, %v3101_v39  ;;  %v739_v39 = vperm.slane %v735_v16, 2 }
 0x125   :  { %2177 = vmatpush.bf16.msra.mxu2 %v3170_v55  ;;  %2190 = vmatpush.bf16.msra.mxu3 %v3266_v58  ;;  %v2994_v55 = vor.u32 %v3521_v43, %v2993_v48  ;;  %v3090_v58 = vor.u32 %v3545_v50, %v3089_v44 }
 0x126   :  { %2197 = vmatpush.bf16.msrb.mxu0 %v3054_v53  ;;  %2210 = vmatpush.bf16.msrb.mxu1 %v3150_v54  ;;  %v3293_v53 = vld [vmem:[#allocation7 + $0x578] sm:$0xf]  ;;  %v3596_v54 = vld [vmem:[#allocation7 + $0x580] sm:$0xf0] }
 0x128   :  { %2178 = vmatmul.bf16.vlgmr.msra.gmra.mxu2 %v3876_v34  ;;  %2191 = vmatmul.bf16.vlgmr.msra.gmra.mxu3 %v3878_v35 }
 0x129   :  { %2222 = vmatpush.bf16.msrb.mxu2 %v3258_v61  ;;  %2235 = vmatpush.bf16.msrb.mxu3 %v3354_v62  ;;  %v3198_v61 = vor.u32 %v3572_v52, %v3197_v51  ;;  %v3294_v62 = vor.u32 %v3596_v54, %v3293_v53 }
 0x12a   :  { %2198 = vmatpush.bf16.msrb.mxu0 %v3042_v56  ;;  %2211 = vmatpush.bf16.msrb.mxu1 %v3138_v6  ;;  %v2982_v56 = vor.u32 %v3518_v60, %v2981_v59  ;;  %v3078_v6 = vor.u32 %v3542_v0, %v3077_v63 }
 0x12d   :  { %2223 = vmatpush.bf16.msrb.mxu2 %v3246_v10  ;;  %2236 = vmatpush.bf16.msrb.mxu3 %v3342_v11  ;;  %v3173_v10 = vld [vmem:[#allocation7 + $0x488] sm:$0xf]  ;;  %v3566_v11 = vld [vmem:[#allocation7 + $0x490] sm:$0xf0] }
 0x12e   :  { %2199 = vmatpush.bf16.msrb.mxu0 %v3030_v18  ;;  %2212 = vmatpush.bf16.msrb.mxu1 %v3126_v19  ;;  %v3174_v14 = vor.u32 %v3566_v11, %v3173_v10  ;;  %v1558_v10 = vld [vmem:[#allocation8 + $0x3] sm:$0x7] }
 0x12f   :  { %v1560_v13 = vperm.slane %v1558_v10, 0 }
 0x131   :  { %2224 = vmatpush.bf16.msrb.mxu2 %v3234_v22  ;;  %2237 = vmatpush.bf16.msrb.mxu3 %v3330_v23 }
 0x132   :  { %2200 = vmatpush.bf16.msrb.mxu0 %v3018_v32  ;;  %2213 = vmatpush.bf16.msrb.mxu1 %v3114_v33 }
 0x135   :  { %2225 = vmatpush.bf16.msrb.mxu2 %v3222_v37  ;;  %2238 = vmatpush.bf16.msrb.mxu3 %v3318_v38 }
 0x136   :  { %2201 = vmatpush.bf16.msrb.mxu0 %v3006_v46  ;;  %2214 = vmatpush.bf16.msrb.mxu1 %v3102_v47 }
 0x139   :  { %2226 = vmatpush.bf16.msrb.mxu2 %v3210_v49  ;;  %2239 = vmatpush.bf16.msrb.mxu3 %v3306_v30  ;;  %v2251_v30 = vld [vmem:[%s3907_s5] sm:$0x7] }
 0x13a   :  { %2202 = vmatpush.bf16.msrb.mxu0 %v2994_v55  ;;  %2215 = vmatpush.bf16.msrb.mxu1 %v3090_v58  ;;  %v2252_v44 = vunpack.c.l.bf16 %v2251_v30 }
 0x13c   :  { %v2267_v52 = vperm.slane %v2252_v44, 0  ;;  %v2268_v53 = vperm.slane %v2252_v44, 2  ;;  %v2269_v0 = vperm.slane %v2252_v44, 4 }
 0x13d   :  { %2227 = vmatpush.bf16.msrb.mxu2 %v3198_v61  ;;  %2240 = vmatpush.bf16.msrb.mxu3 %v3294_v62  ;;  %v1278_v18 = vpop.f32.mrf.mxu0  ;;  %v1291_v19 = vpop.f32.mrf.mxu1 }
 0x13e   :  { %2203 = vmatpush.bf16.msrb.mxu0 %v2982_v56  ;;  %2216 = vmatpush.bf16.msrb.mxu1 %v3078_v6  ;;  %v1279_v20 = vadd.f32 %v1278_v18, %v737_v17  ;;  %v2273_v59 = vperm.slane %v2267_v52, 0  ;;  %v2274_v60 = vperm.slane %v2268_v53, 0  ;;  %v2275_v4 = vperm.slane %v2269_v0, 0 }
 0x140   :  { %v1292_v21 = vadd.f32 %v1291_v19, %v1279_v20 }
 0x141   :  { %2228 = vmatpush.bf16.msrb.mxu2 %v3186_v8  ;;  %2241 = vmatpush.bf16.msrb.mxu3 %v3282_v9 }
 0x142   :  { %2204 = vmatmul.bf16.vlgmr.msrb.gmra.mxu0 %v3870_v57  ;;  %2217 = vmatmul.bf16.vlgmr.msrb.gmra.mxu1 %v3872_v7 }
 0x145   :  { %2229 = vmatpush.bf16.msrb.mxu2 %v3174_v14  ;;  %2242 = vmatpush.bf16.msrb.mxu3 %v3270_v15  ;;  %v1280_v22 = vpop.f32.mrf.mxu0  ;;  %v1293_v23 = vpop.f32.mrf.mxu1 }
 0x148   :  { %2230 = vmatmul.bf16.vlgmr.msrb.gmra.mxu2 %v3876_v34  ;;  %2243 = vmatmul.bf16.vlgmr.msrb.gmra.mxu3 %v3878_v35 }
 0x14b   :  { %v1304_v24 = vpop.f32.mrf.mxu2  ;;  %v1317_v25 = vpop.f32.mrf.mxu3 }
 0x14c   :  { %v1305_v26 = vadd.f32 %v1304_v24, %v1292_v21 }
 0x14d   :  { %v1330_v28 = vpop.f32.mrf.mxu0  ;;  %v1343_v7 = vpop.f32.mrf.mxu1 }
 0x14e   :  { %v1318_v57 = vadd.f32 %v1317_v25, %v1305_v26  ;;  %v1331_v29 = vadd.f32 %v1330_v28, %v738_v27 }
 0x150   :  { %v1344_v32 = vadd.f32 %v1343_v7, %v1331_v29  ;;  %v1425_v31 = vmax.f32 %v1318_v57, 0.0  ;;  %v1561_v29 = vperm.slane %v1558_v10, 1 }
 0x153   :  { %v1306_v33 = vpop.f32.mrf.mxu2  ;;  %v1319_v2 = vpop.f32.mrf.mxu3 }
 0x155   :  { %v1332_v36 = vpop.f32.mrf.mxu0  ;;  %v1345_v37 = vpop.f32.mrf.mxu1 }
 0x15b   :  { %v1356_v34 = vpop.f32.mrf.mxu2  ;;  %v1369_v38 = vpop.f32.mrf.mxu3 }
 0x15c   :  { %v1357_v35 = vadd.f32 %v1356_v34, %v1344_v32 }
 0x15e   :  { %v1370_v40 = vadd.f32 %v1369_v38, %v1357_v35 }
 0x160   :  { %v1382_v41 = vpop.f32.mrf.mxu0  ;;  %v1395_v42 = vpop.f32.mrf.mxu1  ;;  %v1426_v45 = vmax.f32 %v1370_v40, 0.0  ;;  %v1562_v40 = vperm.slane %v1558_v10, 2  ;;  %v2300_v10 = vlaneseq }
 0x161   :  { %v1383_v46 = vadd.f32 %v1382_v41, %v739_v39  ;;  %v3355_v41 = vld [vmem:[%s3907_s5 + $0x3] sm:$0x7] }
 0x162   :  { %v2256_v47 = vpack.c.bf16 %v1426_v45, %v1425_v31  ;;  %v2255_v31 = vunpack.c.l.bf16 %v3355_v41 }
 0x163   :  { %v1396_v48 = vadd.f32 %v1395_v42, %v1383_v46  ;;  %v1358_v43 = vpop.f32.mrf.mxu2  ;;  %v1371_v49 = vpop.f32.mrf.mxu3 }
 0x164   :  { %v2258_v61 = vunpack.c.l.bf16 %v2256_v47  ;;  %v2259_v62 = vunpack.c.h.bf16 %v2256_v47  ;;  %v2284_v49 = vperm.slane %v2255_v31, 0  ;;  %v2285_v30 = vperm.slane %v2255_v31, 2 }
 0x166   :  { %v2276_v5 = vmul.f32 %v2273_v59, %v2258_v61  ;;  %v2277_v56 = vmul.f32 %v2274_v60, %v2259_v62  ;;  %v2286_v61 = vperm.slane %v2255_v31, 4 }
 0x168   :  { %v1384_v50 = vpop.f32.mrf.mxu0  ;;  %v1397_v51 = vpop.f32.mrf.mxu1  ;;  %v2279_v12 = vadd.f32 %v2277_v56, %v2276_v5  ;;  %v2292_v0 = vperm.slane %v2286_v61, 0 }
 0x16b   :  { %v1408_v54 = vpop.f32.mrf.mxu2  ;;  %v1421_v55 = vpop.f32.mrf.mxu3 }
 0x16c   :  { %v1409_v58 = vadd.f32 %v1408_v54, %v1396_v48  ;;  %v2290_v54 = vperm.slane %v2284_v49, 0 }
 0x16e   :  { %v1422_v63 = vadd.f32 %v1421_v55, %v1409_v58  ;;  %v2291_v55 = vperm.slane %v2285_v30, 0 }
 0x170   :  { %v1427_v1 = vmax.f32 %v1422_v63, 0.0 }
 0x172   :  { %v2257_v3 = vpack.c.bf16 %v1427_v1, %v1427_v1 }
 0x173   :  { %v1410_v6 = vpop.f32.mrf.mxu2  ;;  %v1423_v8 = vpop.f32.mrf.mxu3 }
 0x174   :  { %v2260_v9 = vunpack.c.l.bf16 %v2257_v3 }
 0x176   :  { %v2278_v11 = vmul.f32 %v2275_v4, %v2260_v9 }
 0x178   :  { %v2280_v14 = vadd.f32 %v2279_v12, %v2278_v11  ;;  %v2301_v12 = vand.u32 127, %v2300_v10 }
 0x17a   :  { %vm2303_vm0 = vcmp.eq.s32.totalorder %v2301_v12, 1  ;;  %vm2302_vm1 = vcmp.eq.s32.totalorder %v2301_v12, 0 }
 0x180   :  { %v2101_v15 = vpop.f32.mrf.mxu0  ;;  %v2114_v16 = vpop.f32.mrf.mxu1 }
 0x181   :  { %v2102_v17 = vadd.f32 %v2101_v15, %v1560_v13  ;;  %v3623_v13 = vld [vmem:[%s3908_s6] ss:$0 sm:$0xff] }
 0x183   :  { %v2115_v18 = vadd.f32 %v2114_v16, %v2102_v17 }
 0x188   :  { %v2103_v19 = vpop.f32.mrf.mxu0  ;;  %v2116_v20 = vpop.f32.mrf.mxu1 }
 0x18b   :  { %v2127_v21 = vpop.f32.mrf.mxu2  ;;  %v2140_v22 = vpop.f32.mrf.mxu3 }
 0x18c   :  { %v2128_v34 = vadd.f32 %v2127_v21, %v2115_v18 }
 0x18e   :  { %v2141_v42 = vadd.f32 %v2140_v22, %v2128_v34 }
 0x190   :  { %v2248_v47 = vmax.f32 %v2141_v42, 0.0 }
 0x193   :  { %v2129_v23 = vpop.f32.mrf.mxu2  ;;  %v2142_v24 = vpop.f32.mrf.mxu3 }
 0x1a0   :  { %v2153_v25 = vpop.f32.mrf.mxu0  ;;  %v2166_v26 = vpop.f32.mrf.mxu1 }
 0x1a1   :  { %v2154_v2 = vadd.f32 %v2153_v25, %v1561_v29 }
 0x1a3   :  { %v2167_v36 = vadd.f32 %v2166_v26, %v2154_v2 }
 0x1a8   :  { %v2155_v27 = vpop.f32.mrf.mxu0  ;;  %v2168_v57 = vpop.f32.mrf.mxu1 }
 0x1ab   :  { %v2179_v28 = vpop.f32.mrf.mxu2  ;;  %v2192_v7 = vpop.f32.mrf.mxu3 }
 0x1ac   :  { %v2180_v37 = vadd.f32 %v2179_v28, %v2167_v36 }
 0x1ae   :  { %v2193_v39 = vadd.f32 %v2192_v7, %v2180_v37 }
 0x1b0   :  { %v2249_v45 = vmax.f32 %v2193_v39, 0.0 }
 0x1b2   :  { %v2261_v44 = vpack.c.bf16 %v2249_v45, %v2248_v47 }
 0x1b3   :  { %v2181_v32 = vpop.f32.mrf.mxu2  ;;  %v2194_v33 = vpop.f32.mrf.mxu3 }
 0x1b4   :  { %v2263_v58 = vunpack.c.l.bf16 %v2261_v44  ;;  %v2264_v59 = vunpack.c.h.bf16 %v2261_v44 }
 0x1b6   :  { %v2293_v1 = vmul.f32 %v2290_v54, %v2263_v58  ;;  %v2294_v3 = vmul.f32 %v2291_v55, %v2264_v59 }
 0x1b8   :  { %v2296_v8 = vadd.f32 %v2294_v3, %v2293_v1 }
 0x1bf   :  { %v2205_v38 = vpop.f32.mrf.mxu0  ;;  %v2218_v35 = vpop.f32.mrf.mxu1 }
 0x1c0   :  { %v2206_v46 = vadd.f32 %v2205_v38, %v1562_v40 }
 0x1c2   :  { %v2219_v50 = vadd.f32 %v2218_v35, %v2206_v46 }
 0x1c7   :  { %v2207_v48 = vpop.f32.mrf.mxu0  ;;  %v2220_v43 = vpop.f32.mrf.mxu1 }
 0x1cb   :  { %v2231_v51 = vpop.f32.mrf.mxu2  ;;  %v2244_v52 = vpop.f32.mrf.mxu3 }
 0x1cc   :  { %v2232_v53 = vadd.f32 %v2231_v51, %v2219_v50 }
 0x1ce   :  { %v2245_v60 = vadd.f32 %v2244_v52, %v2232_v53 }
 0x1d0   :  { %v2250_v62 = vmax.f32 %v2245_v60, 0.0 }
 0x1d2   :  { %v2262_v63 = vpack.c.bf16 %v2250_v62, %v2250_v62 }
 0x1d3   :  { %v2233_v4 = vpop.f32.mrf.mxu2  ;;  %v2246_v5 = vpop.f32.mrf.mxu3 }
 0x1d4   :  { %v2265_v56 = vunpack.c.l.bf16 %v2262_v63 }
 0x1d6   :  { %v2295_v6 = vmul.f32 %v2292_v0, %v2265_v56 }
 0x1d8   :  { %v2297_v9 = vadd.f32 %v2296_v8, %v2295_v6 }
 0x1da   :  { %2298 = vadd.xlane.f32.xlu0 %v2297_v9 }
 0x1e2   :  { %2281 = vadd.xlane.f32.xlu0 %v2280_v14 }
 0x24d   :  { %v2299_v11 = vpop.xlane.xlu0 %2298 }
 0x24e   :  { %v2304_v15 = vsel %vm2303_vm0, %v2299_v11, 0.0 }
 0x255   :  { %v2282_v16 = vpop.xlane.xlu0 %2281 }
 0x256   :  { %v2305_v17 = vsel %vm2302_vm1, %v2282_v16, %v2304_v15 }
 0x257   :  { %v2310_v18 = vadd.f32 %v3623_v13, %v2305_v17 }
 0x259   :  { %2311 = vst [vmem:[#allocation10] sm:$0xff] %v2310_v18 }
 0x25a   :  { %2322 = dma.vmem_to_hbm [thread:$0]  %s2318_s30, 128, %s2320_s10, [#allocation4]  }
 0x25b   :  { %3750 = dma.done.wait [#allocation4], 128  }
 0x25c   :  { %3751 = vsyncadd [#allocation4], 4294967168 }
 0x25d   :  { %2327 = vsyncpa [#allocation3], 1 }
 0x25e   :  { %2328 = vsyncpa [#allocation6], 1 }
 0x25f   :  { %2329 = vsyncpa [#allocation9], 1 }
 0x260   :  { %2330 = vsyncpa [#allocation4], 1 }

</bundles_post_ra>
